<compile_context>
chip_gen: v7x
topology: tpu7x:2x2x1
jax: 0.10.0
libtpu: 0.0.40
codegen_flags: <defaults>
</compile_context>

<pallas_src>
import functools

import jax
import jax.numpy as jnp
from jax.experimental import pallas as pl
from jax.experimental.pallas import tpu as pltpu


N_HARMONIC = 6
IN_CH = 3
EMB = N_HARMONIC * IN_CH            # 18 rows per sin / per cos block
HIDDEN = 32
N_LAYERS_DIST = 2                   # encoder_layer2 repeated with SHARED weights
                                    # (nn.Sequential.__mul__ repeats the same modules)

E_PAD = 2 * EMB + IN_CH + 1         # 40 embedding rows: [sin | cos | x | ones]

# column layout of the single packed weight slab (HIDDEN x 128)
COL_W1 = 0                          # cols [0, 40): W1^T (embedding-row major)
COL_B1 = E_PAD - 1                  # col 39: b1 (pairs with the ones-row)
COL_W2 = E_PAD                      # cols [40, 72): W2^T (feature-major)
COL_B2 = COL_W2 + HIDDEN            # col 72: b2
COL_WD = COL_B2 + 1                 # cols [73, 105): wd^T in row 0, rows 1..7 zero
COL_BD = COL_WD + HIDDEN            # col 105: bd (row 0)
SLAB_COLS = 128


def _round_up(x, m):
    return ((x + m - 1) // m) * m


def _neural_surface_kernel(x_ref, w_ref, out_ref, *, n_layers, chunk):
    R = w_ref[...]                                       # (H, 128) packed weights
    w1t = R[:, COL_W1:COL_W1 + E_PAD]                    # (H, 40), col 39 = b1
    w2t = R[:, COL_W2:COL_W2 + HIDDEN]                   # (H, H)  = W2^T
    b2 = R[:, COL_B2:COL_B2 + 1]                         # (H, 1)  implicit lane bcast
    wdt = R[0:8, COL_WD:COL_WD + HIDDEN]                 # (8, H)  row 0 = wd^T
    bd = R[0:1, COL_BD:COL_BD + 1]                       # (1, 1)

    ones = jnp.ones((1, chunk), jnp.float32)             # bias row of the embedding
    n_chunks = x_ref.shape[1] // chunk

    # Static (fully unrolled) loop over lane sub-chunks: bounds the per-chunk
    # live set (~40 vregs at chunk=512) while keeping the grid tile large.
    for j in range(n_chunks):
        lo = j * chunk
        X = x_ref[:, lo:lo + chunk]                      # (3, chunk) feature-major

        # Harmonic embedding: sin/cos only for the base frequency; octave f+1
        # from the double-angle recurrence (frequencies are exact 2**f).
        s = jnp.sin(X)
        c = jnp.cos(X)
        sins = [s]
        coss = [c]
        for _ in range(N_HARMONIC - 1):
            s, c = 2.0 * s * c, 2.0 * c * c - 1.0
            sins.append(s)
            coss.append(c)
        # Value-level concat -> sublane shuffles on the (idle) XLU.
        emb = jnp.concatenate(sins + coss + [X, ones], axis=0)   # (40, chunk)

        # encoder_layer1: single MXU dot (bias folded via the ones row) + ReLU
        h = jnp.maximum(
            jnp.dot(w1t, emb, preferred_element_type=jnp.float32), 0.0)

        # encoder_layer2 repeated n_layers times with the SAME weights
        for _ in range(n_layers):
            h = jnp.maximum(
                jnp.dot(w2t, h, preferred_element_type=jnp.float32) + b2, 0.0)

        # distance_head on the MXU: row 0 of (8,32)@(32,chunk), then ReLU
        d = jnp.dot(wdt, h, preferred_element_type=jnp.float32)[0:1, :] + bd
        out_ref[:, lo:lo + chunk] = jnp.maximum(d, 0.0).astype(out_ref.dtype)


def pack_params(params):
    """Pack natural (PyTorch Linear-style) params into one (32,128) slab."""
    w1, b1, w2, b2, wd, bd = params
    # w1: (39, H); PyTorch embedding column order is c*6 + f for sin/cos blocks.
    # Kernel embedding row order is octave-major: f*3 + c.
    w1_sin = w1[:EMB].reshape(IN_CH, N_HARMONIC, HIDDEN).transpose(1, 0, 2)
    w1_sin = w1_sin.reshape(EMB, HIDDEN)                 # row = f*3 + c
    w1_cos = w1[EMB:2 * EMB].reshape(IN_CH, N_HARMONIC, HIDDEN)
    w1_cos = w1_cos.transpose(1, 0, 2).reshape(EMB, HIDDEN)
    w1_x = w1[2 * EMB:]                                  # (3, H)

    slab = jnp.zeros((HIDDEN, SLAB_COLS), jnp.float32)
    slab = slab.at[:, COL_W1:COL_W1 + EMB].set(w1_sin.T)
    slab = slab.at[:, COL_W1 + EMB:COL_W1 + 2 * EMB].set(w1_cos.T)
    slab = slab.at[:, COL_W1 + 2 * EMB:COL_W1 + 2 * EMB + IN_CH].set(w1_x.T)
    slab = slab.at[:, COL_B1].set(b1)                    # folded via ones-row
    slab = slab.at[:, COL_W2:COL_W2 + HIDDEN].set(w2.T)
    slab = slab.at[:, COL_B2].set(b2)
    slab = slab.at[0, COL_WD:COL_WD + HIDDEN].set(wd[:, 0])
    slab = slab.at[0, COL_BD].set(bd[0])
    return slab


@functools.partial(jax.jit, static_argnames=("n_layers", "tile_n"))
def neural_surface_distance(points, params, *, n_layers=N_LAYERS_DIST, tile_n=2048):
    pts = points.reshape(-1, 3).astype(jnp.float32)
    n = pts.shape[0]

    # Tile selection: multiple of 128, no bigger than the (rounded) problem;
    # for large n cap so the grid keeps >= 4 steps (>= 2 per v7x TensorCore)
    # to preserve DMA/compute software pipelining on both cores.
    tile = max(128, (int(tile_n) // 128) * 128)
    tile = min(tile, _round_up(n, 128))
    if n >= 2048:
        tile = min(tile, _round_up(pl.cdiv(n, 4), 128))
    padded_n = _round_up(n, tile)
    grid = (padded_n // tile,)
    chunk = next(c for c in (512, 256, 128) if tile % c == 0)

    # single fused transpose + pad -> feature-major (3, padded_n)
    x_t = jnp.pad(pts.T, ((0, 0), (0, padded_n - n)))
    slab = pack_params(params)

    kernel = functools.partial(_neural_surface_kernel,
                               n_layers=n_layers, chunk=chunk)
    out = pl.pallas_call(
        kernel,
        out_shape=jax.ShapeDtypeStruct((1, padded_n), jnp.float32),
        grid=grid,
        in_specs=[
            pl.BlockSpec((IN_CH, tile), lambda i: (0, i)),           # points
            pl.BlockSpec((HIDDEN, SLAB_COLS), lambda i: (0, 0)),     # weight slab
        ],
        out_specs=pl.BlockSpec((1, tile), lambda i: (0, i)),         # lane-dense
        compiler_params=pltpu.CompilerParams(
            dimension_semantics=("parallel",)),
    )(x_t, slab)

    return out[:, :n].reshape(n, 1)


def make_params(key):
    """Deterministic synthetic parameters (PyTorch Linear-style uniform init)."""
    def lin(k, fan_in, fan_out):
        kw, kb = jax.random.split(k)
        bound = 1.0 / jnp.sqrt(float(fan_in))
        w = jax.random.uniform(kw, (fan_in, fan_out), jnp.float32, -bound, bound)
        b = jax.random.uniform(kb, (fan_out,), jnp.float32, -bound, bound)
        return w, b

    k1, k2, k3 = jax.random.split(key, 3)
    emb_dim = 2 * EMB + IN_CH                                        # 39
    w1, b1 = lin(k1, emb_dim, HIDDEN)
    w2, b2 = lin(k2, HIDDEN, HIDDEN)
    wd, bd = lin(k3, HIDDEN, 1)
    return (w1, b1, w2, b2, wd, bd)


def reference_distance(points, params, n_layers=N_LAYERS_DIST):
    """Pure-JAX reference mirroring the PyTorch forward (HIGHEST-precision dots)."""
    w1, b1, w2, b2, wd, bd = params
    x = points.reshape(-1, 3).astype(jnp.float32)
    freqs = 2.0 ** jnp.arange(N_HARMONIC, dtype=jnp.float32)
    emb = (x[..., None] * freqs).reshape(x.shape[0], -1)
    full_emb = jnp.concatenate([jnp.sin(emb), jnp.cos(emb), x], axis=-1)
    hp = jax.lax.Precision.HIGHEST
    h = jax.nn.relu(jnp.dot(full_emb, w1, precision=hp) + b1)
    for _ in range(n_layers):
        h = jax.nn.relu(jnp.dot(h, w2, precision=hp) + b2)
    return jax.nn.relu(jnp.dot(h, wd, precision=hp) + bd)


# TODO(synk): get_color (color_head MLP) and get_distance_and_gradient /
# get_surface_normal (autograd of the kernel w.r.t. input points) are not
# implemented; only forward == get_distance is a Pallas kernel.

if __name__ == "__main__":
    key = jax.random.PRNGKey(0)
    kp, kx = jax.random.split(key)
    params = make_params(kp)

    n_points = 3000   # not a multiple of 128: exercises padding, grid=4, chunk loop
    points = jax.random.normal(kx, (n_points, 3), jnp.float32)

    dist = neural_surface_distance(points, params)
    dist = jax.block_until_ready(dist)

    ref = reference_distance(points, params)
    assert dist.shape == (n_points, 1)
    err = float(jnp.max(jnp.abs(dist - ref)))
    assert jnp.allclose(dist, ref, rtol=1e-3, atol=1e-3), f"mismatch vs reference (max abs err {err})"

    print("KERNEL_OK")
</pallas_src>

<mosaic_0001>
module attributes {stable_mosaic.version = 11 : i64} {
  func.func @_neural_surface_kernel(%arg0: i32, %arg1: memref<3x768xf32, #tpu.memory_space<vmem>>, %arg2: memref<32x128xf32, #tpu.memory_space<vmem>>, %arg3: memref<1x768xf32, #tpu.memory_space<vmem>>) attributes {dimension_semantics = [#tpu.dimension_semantics<parallel>], iteration_bounds = array<i64: 4>, scalar_prefetch = 0 : i64, scratch_operands = 0 : i64, tpu.core_type = #tpu.core_type<tc>, window_params = [{transform_indices = @transform_0, window_bounds = array<i64: 3, 768>}, {pipeline_mode = #tpu.pipeline_mode<synchronous>, transform_indices = @transform_1, window_bounds = array<i64: 32, 128>}, {transform_indices = @transform_2, window_bounds = array<i64: 1, 768>}]} {
    %c0 = arith.constant 0 : index
    %c0_0 = arith.constant 0 : index
    %0 = vector.load %arg2[%c0, %c0_0] : memref<32x128xf32, #tpu.memory_space<vmem>>, vector<32x128xf32>
    %1 = vector.extract_strided_slice %0 {offsets = [0, 0], sizes = [32, 40], strides = [1, 1]} : vector<32x128xf32> to vector<32x40xf32>
    %2 = vector.extract_strided_slice %0 {offsets = [0, 40], sizes = [32, 32], strides = [1, 1]} : vector<32x128xf32> to vector<32x32xf32>
    %3 = vector.extract_strided_slice %0 {offsets = [0, 72], sizes = [32, 1], strides = [1, 1]} : vector<32x128xf32> to vector<32x1xf32>
    %4 = vector.extract_strided_slice %0 {offsets = [0, 73], sizes = [8, 32], strides = [1, 1]} : vector<32x128xf32> to vector<8x32xf32>
    %5 = vector.extract_strided_slice %0 {offsets = [0, 105], sizes = [1, 1], strides = [1, 1]} : vector<32x128xf32> to vector<1x1xf32>
    %cst = arith.constant 1.000000e+00 : f32
    %6 = vector.broadcast %cst : f32 to vector<1x256xf32>
    %c0_1 = arith.constant 0 : index
    %c0_2 = arith.constant 0 : index
    %7 = vector.load %arg1[%c0_1, %c0_2] : memref<3x768xf32, #tpu.memory_space<vmem>>, vector<3x256xf32>
    %8 = math.sin %7 : vector<3x256xf32>
    %9 = math.cos %7 : vector<3x256xf32>
    %cst_3 = arith.constant 2.000000e+00 : f32
    %10 = vector.broadcast %cst_3 : f32 to vector<3x256xf32>
    %11 = arith.mulf %10, %8 : vector<3x256xf32>
    %12 = arith.mulf %11, %9 : vector<3x256xf32>
    %cst_4 = arith.constant 2.000000e+00 : f32
    %13 = vector.broadcast %cst_4 : f32 to vector<3x256xf32>
    %14 = arith.mulf %13, %9 : vector<3x256xf32>
    %15 = arith.mulf %14, %9 : vector<3x256xf32>
    %cst_5 = arith.constant 1.000000e+00 : f32
    %16 = vector.broadcast %cst_5 : f32 to vector<3x256xf32>
    %17 = arith.subf %15, %16 : vector<3x256xf32>
    %cst_6 = arith.constant 2.000000e+00 : f32
    %18 = vector.broadcast %cst_6 : f32 to vector<3x256xf32>
    %19 = arith.mulf %18, %12 : vector<3x256xf32>
    %20 = arith.mulf %19, %17 : vector<3x256xf32>
    %cst_7 = arith.constant 2.000000e+00 : f32
    %21 = vector.broadcast %cst_7 : f32 to vector<3x256xf32>
    %22 = arith.mulf %21, %17 : vector<3x256xf32>
    %23 = arith.mulf %22, %17 : vector<3x256xf32>
    %cst_8 = arith.constant 1.000000e+00 : f32
    %24 = vector.broadcast %cst_8 : f32 to vector<3x256xf32>
    %25 = arith.subf %23, %24 : vector<3x256xf32>
    %cst_9 = arith.constant 2.000000e+00 : f32
    %26 = vector.broadcast %cst_9 : f32 to vector<3x256xf32>
    %27 = arith.mulf %26, %20 : vector<3x256xf32>
    %28 = arith.mulf %27, %25 : vector<3x256xf32>
    %cst_10 = arith.constant 2.000000e+00 : f32
    %29 = vector.broadcast %cst_10 : f32 to vector<3x256xf32>
    %30 = arith.mulf %29, %25 : vector<3x256xf32>
    %31 = arith.mulf %30, %25 : vector<3x256xf32>
    %cst_11 = arith.constant 1.000000e+00 : f32
    %32 = vector.broadcast %cst_11 : f32 to vector<3x256xf32>
    %33 = arith.subf %31, %32 : vector<3x256xf32>
    %cst_12 = arith.constant 2.000000e+00 : f32
    %34 = vector.broadcast %cst_12 : f32 to vector<3x256xf32>
    %35 = arith.mulf %34, %28 : vector<3x256xf32>
    %36 = arith.mulf %35, %33 : vector<3x256xf32>
    %cst_13 = arith.constant 2.000000e+00 : f32
    %37 = vector.broadcast %cst_13 : f32 to vector<3x256xf32>
    %38 = arith.mulf %37, %33 : vector<3x256xf32>
    %39 = arith.mulf %38, %33 : vector<3x256xf32>
    %cst_14 = arith.constant 1.000000e+00 : f32
    %40 = vector.broadcast %cst_14 : f32 to vector<3x256xf32>
    %41 = arith.subf %39, %40 : vector<3x256xf32>
    %cst_15 = arith.constant 2.000000e+00 : f32
    %42 = vector.broadcast %cst_15 : f32 to vector<3x256xf32>
    %43 = arith.mulf %42, %36 : vector<3x256xf32>
    %44 = arith.mulf %43, %41 : vector<3x256xf32>
    %cst_16 = arith.constant 2.000000e+00 : f32
    %45 = vector.broadcast %cst_16 : f32 to vector<3x256xf32>
    %46 = arith.mulf %45, %41 : vector<3x256xf32>
    %47 = arith.mulf %46, %41 : vector<3x256xf32>
    %cst_17 = arith.constant 1.000000e+00 : f32
    %48 = vector.broadcast %cst_17 : f32 to vector<3x256xf32>
    %49 = arith.subf %47, %48 : vector<3x256xf32>
    %50 = tpu.concatenate %8, %12, %20, %28, %36, %44, %9, %17, %25, %33, %41, %49, %7, %6 in 0 : vector<3x256xf32>, vector<3x256xf32>, vector<3x256xf32>, vector<3x256xf32>, vector<3x256xf32>, vector<3x256xf32>, vector<3x256xf32>, vector<3x256xf32>, vector<3x256xf32>, vector<3x256xf32>, vector<3x256xf32>, vector<3x256xf32>, vector<3x256xf32>, vector<1x256xf32> -> vector<40x256xf32>
    %cst_18 = arith.constant dense<0.000000e+00> : vector<32x256xf32>
    %51 = tpu.matmul %1, %50, %cst_18 {dimension_numbers = #tpu.dot_dimension_numbers<[1], [0], [0], [1], [0, 0, 1, 1], [], []>} : vector<32x40xf32>, vector<40x256xf32>, vector<32x256xf32> -> vector<32x256xf32>
    %cst_19 = arith.constant 0.000000e+00 : f32
    %52 = vector.broadcast %cst_19 : f32 to vector<32x256xf32>
    %53 = arith.maximumf %51, %52 : vector<32x256xf32>
    %cst_20 = arith.constant dense<0.000000e+00> : vector<32x256xf32>
    %54 = tpu.matmul %2, %53, %cst_20 {dimension_numbers = #tpu.dot_dimension_numbers<[1], [0], [0], [1], [0, 0, 1, 1], [], []>} : vector<32x32xf32>, vector<32x256xf32>, vector<32x256xf32> -> vector<32x256xf32>
    %55 = vector.broadcast %3 : vector<32x1xf32> to vector<32x256xf32>
    %56 = arith.addf %54, %55 : vector<32x256xf32>
    %cst_21 = arith.constant 0.000000e+00 : f32
    %57 = vector.broadcast %cst_21 : f32 to vector<32x256xf32>
    %58 = arith.maximumf %56, %57 : vector<32x256xf32>
    %cst_22 = arith.constant dense<0.000000e+00> : vector<32x256xf32>
    %59 = tpu.matmul %2, %58, %cst_22 {dimension_numbers = #tpu.dot_dimension_numbers<[1], [0], [0], [1], [0, 0, 1, 1], [], []>} : vector<32x32xf32>, vector<32x256xf32>, vector<32x256xf32> -> vector<32x256xf32>
    %60 = vector.broadcast %3 : vector<32x1xf32> to vector<32x256xf32>
    %61 = arith.addf %59, %60 : vector<32x256xf32>
    %cst_23 = arith.constant 0.000000e+00 : f32
    %62 = vector.broadcast %cst_23 : f32 to vector<32x256xf32>
    %63 = arith.maximumf %61, %62 : vector<32x256xf32>
    %cst_24 = arith.constant dense<0.000000e+00> : vector<8x256xf32>
    %64 = tpu.matmul %4, %63, %cst_24 {dimension_numbers = #tpu.dot_dimension_numbers<[1], [0], [0], [1], [0, 0, 1, 1], [], []>} : vector<8x32xf32>, vector<32x256xf32>, vector<8x256xf32> -> vector<8x256xf32>
    %65 = vector.extract_strided_slice %64 {offsets = [0, 0], sizes = [1, 256], strides = [1, 1]} : vector<8x256xf32> to vector<1x256xf32>
    %66 = vector.broadcast %5 : vector<1x1xf32> to vector<1x256xf32>
    %67 = arith.addf %65, %66 : vector<1x256xf32>
    %cst_25 = arith.constant 0.000000e+00 : f32
    %68 = vector.broadcast %cst_25 : f32 to vector<1x256xf32>
    %69 = arith.maximumf %67, %68 : vector<1x256xf32>
    %c0_26 = arith.constant 0 : index
    %c0_27 = arith.constant 0 : index
    %70 = vector.load %arg3[%c0_26, %c0_27] : memref<1x768xf32, #tpu.memory_space<vmem>>, vector<1x256xf32>
    tpu.vector_store %arg3[%c0_26, %c0_27], %69 {strides = array<i32>} : memref<1x768xf32, #tpu.memory_space<vmem>>, vector<1x256xf32>,
    %c0_28 = arith.constant 0 : index
    %c256 = arith.constant 256 : index
    %71 = vector.load %arg1[%c0_28, %c256] : memref<3x768xf32, #tpu.memory_space<vmem>>, vector<3x256xf32>
    %72 = math.sin %71 : vector<3x256xf32>
    %73 = math.cos %71 : vector<3x256xf32>
    %cst_29 = arith.constant 2.000000e+00 : f32
    %74 = vector.broadcast %cst_29 : f32 to vector<3x256xf32>
    %75 = arith.mulf %74, %72 : vector<3x256xf32>
    %76 = arith.mulf %75, %73 : vector<3x256xf32>
    %cst_30 = arith.constant 2.000000e+00 : f32
    %77 = vector.broadcast %cst_30 : f32 to vector<3x256xf32>
    %78 = arith.mulf %77, %73 : vector<3x256xf32>
    %79 = arith.mulf %78, %73 : vector<3x256xf32>
    %cst_31 = arith.constant 1.000000e+00 : f32
    %80 = vector.broadcast %cst_31 : f32 to vector<3x256xf32>
    %81 = arith.subf %79, %80 : vector<3x256xf32>
    %cst_32 = arith.constant 2.000000e+00 : f32
    %82 = vector.broadcast %cst_32 : f32 to vector<3x256xf32>
    %83 = arith.mulf %82, %76 : vector<3x256xf32>
    %84 = arith.mulf %83, %81 : vector<3x256xf32>
    %cst_33 = arith.constant 2.000000e+00 : f32
    %85 = vector.broadcast %cst_33 : f32 to vector<3x256xf32>
    %86 = arith.mulf %85, %81 : vector<3x256xf32>
    %87 = arith.mulf %86, %81 : vector<3x256xf32>
    %cst_34 = arith.constant 1.000000e+00 : f32
    %88 = vector.broadcast %cst_34 : f32 to vector<3x256xf32>
    %89 = arith.subf %87, %88 : vector<3x256xf32>
    %cst_35 = arith.constant 2.000000e+00 : f32
    %90 = vector.broadcast %cst_35 : f32 to vector<3x256xf32>
    %91 = arith.mulf %90, %84 : vector<3x256xf32>
    %92 = arith.mulf %91, %89 : vector<3x256xf32>
    %cst_36 = arith.constant 2.000000e+00 : f32
    %93 = vector.broadcast %cst_36 : f32 to vector<3x256xf32>
    %94 = arith.mulf %93, %89 : vector<3x256xf32>
    %95 = arith.mulf %94, %89 : vector<3x256xf32>
    %cst_37 = arith.constant 1.000000e+00 : f32
    %96 = vector.broadcast %cst_37 : f32 to vector<3x256xf32>
    %97 = arith.subf %95, %96 : vector<3x256xf32>
    %cst_38 = arith.constant 2.000000e+00 : f32
    %98 = vector.broadcast %cst_38 : f32 to vector<3x256xf32>
    %99 = arith.mulf %98, %92 : vector<3x256xf32>
    %100 = arith.mulf %99, %97 : vector<3x256xf32>
    %cst_39 = arith.constant 2.000000e+00 : f32
    %101 = vector.broadcast %cst_39 : f32 to vector<3x256xf32>
    %102 = arith.mulf %101, %97 : vector<3x256xf32>
    %103 = arith.mulf %102, %97 : vector<3x256xf32>
    %cst_40 = arith.constant 1.000000e+00 : f32
    %104 = vector.broadcast %cst_40 : f32 to vector<3x256xf32>
    %105 = arith.subf %103, %104 : vector<3x256xf32>
    %cst_41 = arith.constant 2.000000e+00 : f32
    %106 = vector.broadcast %cst_41 : f32 to vector<3x256xf32>
    %107 = arith.mulf %106, %100 : vector<3x256xf32>
    %108 = arith.mulf %107, %105 : vector<3x256xf32>
    %cst_42 = arith.constant 2.000000e+00 : f32
    %109 = vector.broadcast %cst_42 : f32 to vector<3x256xf32>
    %110 = arith.mulf %109, %105 : vector<3x256xf32>
    %111 = arith.mulf %110, %105 : vector<3x256xf32>
    %cst_43 = arith.constant 1.000000e+00 : f32
    %112 = vector.broadcast %cst_43 : f32 to vector<3x256xf32>
    %113 = arith.subf %111, %112 : vector<3x256xf32>
    %114 = tpu.concatenate %72, %76, %84, %92, %100, %108, %73, %81, %89, %97, %105, %113, %71, %6 in 0 : vector<3x256xf32>, vector<3x256xf32>, vector<3x256xf32>, vector<3x256xf32>, vector<3x256xf32>, vector<3x256xf32>, vector<3x256xf32>, vector<3x256xf32>, vector<3x256xf32>, vector<3x256xf32>, vector<3x256xf32>, vector<3x256xf32>, vector<3x256xf32>, vector<1x256xf32> -> vector<40x256xf32>
    %cst_44 = arith.constant dense<0.000000e+00> : vector<32x256xf32>
    %115 = tpu.matmul %1, %114, %cst_44 {dimension_numbers = #tpu.dot_dimension_numbers<[1], [0], [0], [1], [0, 0, 1, 1], [], []>} : vector<32x40xf32>, vector<40x256xf32>, vector<32x256xf32> -> vector<32x256xf32>
    %cst_45 = arith.constant 0.000000e+00 : f32
    %116 = vector.broadcast %cst_45 : f32 to vector<32x256xf32>
    %117 = arith.maximumf %115, %116 : vector<32x256xf32>
    %cst_46 = arith.constant dense<0.000000e+00> : vector<32x256xf32>
    %118 = tpu.matmul %2, %117, %cst_46 {dimension_numbers = #tpu.dot_dimension_numbers<[1], [0], [0], [1], [0, 0, 1, 1], [], []>} : vector<32x32xf32>, vector<32x256xf32>, vector<32x256xf32> -> vector<32x256xf32>
    %119 = vector.broadcast %3 : vector<32x1xf32> to vector<32x256xf32>
    %120 = arith.addf %118, %119 : vector<32x256xf32>
    %cst_47 = arith.constant 0.000000e+00 : f32
    %121 = vector.broadcast %cst_47 : f32 to vector<32x256xf32>
    %122 = arith.maximumf %120, %121 : vector<32x256xf32>
    %cst_48 = arith.constant dense<0.000000e+00> : vector<32x256xf32>
    %123 = tpu.matmul %2, %122, %cst_48 {dimension_numbers = #tpu.dot_dimension_numbers<[1], [0], [0], [1], [0, 0, 1, 1], [], []>} : vector<32x32xf32>, vector<32x256xf32>, vector<32x256xf32> -> vector<32x256xf32>
    %124 = vector.broadcast %3 : vector<32x1xf32> to vector<32x256xf32>
    %125 = arith.addf %123, %124 : vector<32x256xf32>
    %cst_49 = arith.constant 0.000000e+00 : f32
    %126 = vector.broadcast %cst_49 : f32 to vector<32x256xf32>
    %127 = arith.maximumf %125, %126 : vector<32x256xf32>
    %cst_50 = arith.constant dense<0.000000e+00> : vector<8x256xf32>
    %128 = tpu.matmul %4, %127, %cst_50 {dimension_numbers = #tpu.dot_dimension_numbers<[1], [0], [0], [1], [0, 0, 1, 1], [], []>} : vector<8x32xf32>, vector<32x256xf32>, vector<8x256xf32> -> vector<8x256xf32>
    %129 = vector.extract_strided_slice %128 {offsets = [0, 0], sizes = [1, 256], strides = [1, 1]} : vector<8x256xf32> to vector<1x256xf32>
    %130 = vector.broadcast %5 : vector<1x1xf32> to vector<1x256xf32>
    %131 = arith.addf %129, %130 : vector<1x256xf32>
    %cst_51 = arith.constant 0.000000e+00 : f32
    %132 = vector.broadcast %cst_51 : f32 to vector<1x256xf32>
    %133 = arith.maximumf %131, %132 : vector<1x256xf32>
    %c0_52 = arith.constant 0 : index
    %c256_53 = arith.constant 256 : index
    %134 = vector.load %arg3[%c0_52, %c256_53] : memref<1x768xf32, #tpu.memory_space<vmem>>, vector<1x256xf32>
    tpu.vector_store %arg3[%c0_52, %c256_53], %133 {strides = array<i32>} : memref<1x768xf32, #tpu.memory_space<vmem>>, vector<1x256xf32>,
    %c0_54 = arith.constant 0 : index
    %c512 = arith.constant 512 : index
    %135 = vector.load %arg1[%c0_54, %c512] : memref<3x768xf32, #tpu.memory_space<vmem>>, vector<3x256xf32>
    %136 = math.sin %135 : vector<3x256xf32>
    %137 = math.cos %135 : vector<3x256xf32>
    %cst_55 = arith.constant 2.000000e+00 : f32
    %138 = vector.broadcast %cst_55 : f32 to vector<3x256xf32>
    %139 = arith.mulf %138, %136 : vector<3x256xf32>
    %140 = arith.mulf %139, %137 : vector<3x256xf32>
    %cst_56 = arith.constant 2.000000e+00 : f32
    %141 = vector.broadcast %cst_56 : f32 to vector<3x256xf32>
    %142 = arith.mulf %141, %137 : vector<3x256xf32>
    %143 = arith.mulf %142, %137 : vector<3x256xf32>
    %cst_57 = arith.constant 1.000000e+00 : f32
    %144 = vector.broadcast %cst_57 : f32 to vector<3x256xf32>
    %145 = arith.subf %143, %144 : vector<3x256xf32>
    %cst_58 = arith.constant 2.000000e+00 : f32
    %146 = vector.broadcast %cst_58 : f32 to vector<3x256xf32>
    %147 = arith.mulf %146, %140 : vector<3x256xf32>
    %148 = arith.mulf %147, %145 : vector<3x256xf32>
    %cst_59 = arith.constant 2.000000e+00 : f32
    %149 = vector.broadcast %cst_59 : f32 to vector<3x256xf32>
    %150 = arith.mulf %149, %145 : vector<3x256xf32>
    %151 = arith.mulf %150, %145 : vector<3x256xf32>
    %cst_60 = arith.constant 1.000000e+00 : f32
    %152 = vector.broadcast %cst_60 : f32 to vector<3x256xf32>
    %153 = arith.subf %151, %152 : vector<3x256xf32>
    %cst_61 = arith.constant 2.000000e+00 : f32
    %154 = vector.broadcast %cst_61 : f32 to vector<3x256xf32>
    %155 = arith.mulf %154, %148 : vector<3x256xf32>
    %156 = arith.mulf %155, %153 : vector<3x256xf32>
    %cst_62 = arith.constant 2.000000e+00 : f32
    %157 = vector.broadcast %cst_62 : f32 to vector<3x256xf32>
    %158 = arith.mulf %157, %153 : vector<3x256xf32>
    %159 = arith.mulf %158, %153 : vector<3x256xf32>
    %cst_63 = arith.constant 1.000000e+00 : f32
    %160 = vector.broadcast %cst_63 : f32 to vector<3x256xf32>
    %161 = arith.subf %159, %160 : vector<3x256xf32>
    %cst_64 = arith.constant 2.000000e+00 : f32
    %162 = vector.broadcast %cst_64 : f32 to vector<3x256xf32>
    %163 = arith.mulf %162, %156 : vector<3x256xf32>
    %164 = arith.mulf %163, %161 : vector<3x256xf32>
    %cst_65 = arith.constant 2.000000e+00 : f32
    %165 = vector.broadcast %cst_65 : f32 to vector<3x256xf32>
    %166 = arith.mulf %165, %161 : vector<3x256xf32>
    %167 = arith.mulf %166, %161 : vector<3x256xf32>
    %cst_66 = arith.constant 1.000000e+00 : f32
    %168 = vector.broadcast %cst_66 : f32 to vector<3x256xf32>
    %169 = arith.subf %167, %168 : vector<3x256xf32>
    %cst_67 = arith.constant 2.000000e+00 : f32
    %170 = vector.broadcast %cst_67 : f32 to vector<3x256xf32>
    %171 = arith.mulf %170, %164 : vector<3x256xf32>
    %172 = arith.mulf %171, %169 : vector<3x256xf32>
    %cst_68 = arith.constant 2.000000e+00 : f32
    %173 = vector.broadcast %cst_68 : f32 to vector<3x256xf32>
    %174 = arith.mulf %173, %169 : vector<3x256xf32>
    %175 = arith.mulf %174, %169 : vector<3x256xf32>
    %cst_69 = arith.constant 1.000000e+00 : f32
    %176 = vector.broadcast %cst_69 : f32 to vector<3x256xf32>
    %177 = arith.subf %175, %176 : vector<3x256xf32>
    %178 = tpu.concatenate %136, %140, %148, %156, %164, %172, %137, %145, %153, %161, %169, %177, %135, %6 in 0 : vector<3x256xf32>, vector<3x256xf32>, vector<3x256xf32>, vector<3x256xf32>, vector<3x256xf32>, vector<3x256xf32>, vector<3x256xf32>, vector<3x256xf32>, vector<3x256xf32>, vector<3x256xf32>, vector<3x256xf32>, vector<3x256xf32>, vector<3x256xf32>, vector<1x256xf32> -> vector<40x256xf32>
    %cst_70 = arith.constant dense<0.000000e+00> : vector<32x256xf32>
    %179 = tpu.matmul %1, %178, %cst_70 {dimension_numbers = #tpu.dot_dimension_numbers<[1], [0], [0], [1], [0, 0, 1, 1], [], []>} : vector<32x40xf32>, vector<40x256xf32>, vector<32x256xf32> -> vector<32x256xf32>
    %cst_71 = arith.constant 0.000000e+00 : f32
    %180 = vector.broadcast %cst_71 : f32 to vector<32x256xf32>
    %181 = arith.maximumf %179, %180 : vector<32x256xf32>
    %cst_72 = arith.constant dense<0.000000e+00> : vector<32x256xf32>
    %182 = tpu.matmul %2, %181, %cst_72 {dimension_numbers = #tpu.dot_dimension_numbers<[1], [0], [0], [1], [0, 0, 1, 1], [], []>} : vector<32x32xf32>, vector<32x256xf32>, vector<32x256xf32> -> vector<32x256xf32>
    %183 = vector.broadcast %3 : vector<32x1xf32> to vector<32x256xf32>
    %184 = arith.addf %182, %183 : vector<32x256xf32>
    %cst_73 = arith.constant 0.000000e+00 : f32
    %185 = vector.broadcast %cst_73 : f32 to vector<32x256xf32>
    %186 = arith.maximumf %184, %185 : vector<32x256xf32>
    %cst_74 = arith.constant dense<0.000000e+00> : vector<32x256xf32>
    %187 = tpu.matmul %2, %186, %cst_74 {dimension_numbers = #tpu.dot_dimension_numbers<[1], [0], [0], [1], [0, 0, 1, 1], [], []>} : vector<32x32xf32>, vector<32x256xf32>, vector<32x256xf32> -> vector<32x256xf32>
    %188 = vector.broadcast %3 : vector<32x1xf32> to vector<32x256xf32>
    %189 = arith.addf %187, %188 : vector<32x256xf32>
    %cst_75 = arith.constant 0.000000e+00 : f32
    %190 = vector.broadcast %cst_75 : f32 to vector<32x256xf32>
    %191 = arith.maximumf %189, %190 : vector<32x256xf32>
    %cst_76 = arith.constant dense<0.000000e+00> : vector<8x256xf32>
    %192 = tpu.matmul %4, %191, %cst_76 {dimension_numbers = #tpu.dot_dimension_numbers<[1], [0], [0], [1], [0, 0, 1, 1], [], []>} : vector<8x32xf32>, vector<32x256xf32>, vector<8x256xf32> -> vector<8x256xf32>
    %193 = vector.extract_strided_slice %192 {offsets = [0, 0], sizes = [1, 256], strides = [1, 1]} : vector<8x256xf32> to vector<1x256xf32>
    %194 = vector.broadcast %5 : vector<1x1xf32> to vector<1x256xf32>
    %195 = arith.addf %193, %194 : vector<1x256xf32>
    %cst_77 = arith.constant 0.000000e+00 : f32
    %196 = vector.broadcast %cst_77 : f32 to vector<1x256xf32>
    %197 = arith.maximumf %195, %196 : vector<1x256xf32>
    %c0_78 = arith.constant 0 : index
    %c512_79 = arith.constant 512 : index
    %198 = vector.load %arg3[%c0_78, %c512_79] : memref<1x768xf32, #tpu.memory_space<vmem>>, vector<1x256xf32>
    tpu.vector_store %arg3[%c0_78, %c512_79], %197 {strides = array<i32>} : memref<1x768xf32, #tpu.memory_space<vmem>>, vector<1x256xf32>,
    return
  }
  func.func @transform_0(%arg0: i32) -> (i32, i32) {
    %c0_i32 = arith.constant 0 : i32
    %c0_i32_0 = arith.constant 0 : i32
    return %c0_i32, %arg0 : i32, i32
  }
  func.func @transform_1(%arg0: i32) -> (i32, i32) {
    %c0_i32 = arith.constant 0 : i32
    %c0_i32_0 = arith.constant 0 : i32
    %c0_i32_1 = arith.constant 0 : i32
    return %c0_i32, %c0_i32_0 : i32, i32
  }
  func.func @transform_2(%arg0: i32) -> (i32, i32) {
    %c0_i32 = arith.constant 0 : i32
    %c0_i32_0 = arith.constant 0 : i32
    return %c0_i32, %arg0 : i32, i32
  }
}

</mosaic_0001>

<bundles_post_ra>
// kernel: neural_surface_distance.1
= control target key start
LH: loop header
LB: loop body
LE: loop exit
PB: predicated region body
PF: predicated region fallthrough
CT: control target
= control target key end

     0   :  { %s2663_s9 = smov 0   ;;  %s3296_s0 = inlined_call_operand.vmem [shape: f32[3,3072], index: 0, kind: input, shape index: {}]   ;;  %s3297_s1 = inlined_call_operand.vmem [shape: f32[32,128], index: 1, kind: input, shape index: {}]   ;;  %s3298_s2 = inlined_call_operand.vmem [shape: f32[1,3072], index: 2, kind: output, shape index: {}]  }
   0x1 LB: > { %s2388_s10 = sadd.s32 4294967295, %s2634_s9   ;;  %p2392_p0 = scmp.ge.s32.totalorder %s2634_s9, 1  ;;  %s2634_s9 = sphi %s2663_s9, %s12_s9  }
   0x2   : > { %p113_p1 = scmp.lt.s32.totalorder %s2634_s9, 5 }
   0x4   : > { %p114_p2 = pnand %p2392_p0, %p113_p1 }
   0x5   : > { %s134_s11 = smul.u32 (!%p114_p2), 6, %s2388_s10  ;;  %v2636_v0 = vmov (!%p114_p2), 0.0   ;;  %v2691_v9 = vld [vmem:[%s3297_s1] sm:$0xff] (!%p114_p2)  ;;  %v2696_v10 = vld [vmem:[%s3297_s1 + $0x10] sm:$0xff] (!%p114_p2)  ;;  %s2637_s20 = smov (!%p114_p2), 88   ;;  %v2708_v25 = vld [vmem:[%s3297_s1 + $0x18] sm:$0xff] (!%p114_p2) }
   0x6   : > { %117 = sbr.rel (%p114_p2) target bundleno = 2489 (0x9b9), region = 28  ;;  %556 = vmatprep.mubr.f32.mxu0 (!%p114_p2), %v2636_v0  ;;  %698 = vmatprep.mubr.f32.mxu1 (!%p114_p2), %v2636_v0  ;;  %v2638_v15 = vmov (!%p114_p2), 683565275   ;;  %v2639_v17 = vmov (!%p114_p2), 2475754826   ;;  %v2717_v30 = vld [vmem:[%s3297_s1 + $0x8] sm:$0xff] (!%p114_p2) }
   0x7   : > { %p135_p3 = scmp.lt.s32.totalorder (!%p114_p2), %s134_s11, 23  ;;  %609 = vrot.lane.b32.xlu1 (!%p114_p2), %v2696_v10, %s2637_s20  ;;  %605 = vrot.lane.b32.xlu0 (!%p114_p2), %v2691_v9, %s2637_s20  ;;  %v2640_v19 = vmov (!%p114_p2), 2131351028   ;;  %v2641_v21 = vmov (!%p114_p2), 2102212464   ;;  %s2645_s25 = smov (!%p114_p2), 55  }
   0x8   : > { %v2642_v23 = vmov (!%p114_p2), 920167782   ;;  %v2643_v32 = vmov (!%p114_p2), 1326507024  }
   0xb   : > { %611 = vrot.lane.b32.xlu1 (!%p114_p2), %v2708_v25, %s2637_s20  ;;  %607 = vrot.lane.b32.xlu0 (!%p114_p2), %v2717_v30, %s2637_s20 }
   0xd   : > { %s3307_s11 = smov (!%p135_p3, %s134_s11), 23 }
   0xe   : > { %s2393_s12 = sshll.u32 %s3307_s11, 2  ;;  %s3038_s8 = scalar_lea.vmem %s3298_s2, %s3307_s11 }
   0xf   : > { %s2679_s15 = scalar_lea.vmem %s3296_s0, %s2393_s12 }
  0x10   : > { %v2682_v1 = vld [vmem:[%s2679_s15] sm:$0x77] }
  0x11   : > { %v153_v2 = vand.u32 2139095040, %v2682_v1  ;;  %v150_v4 = vand.u32 2147483647, %v2682_v1  ;;  %vm152_vm7 = vcmp.lt.s32.totalorder %v2682_v1, 0  ;;  %vm242_vm15 = vweird.f32 %v2682_v1 }
  0x13   : > { %v154_v3 = vshrl.u32 %v153_v2, 23  ;;  %v157_v7 = vand.u32 8388607, %v150_v4  ;;  %vm151_vm8 = vcmp.le.f32.partialorder %v150_v4, 0.7853982 }
  0x15   : > { %v2394_v5 = vadd.s32 4294967169, %v154_v3  ;;  %v158_v12 = vor.u32 8388608, %v157_v7 }
  0x17   : > { %v160_v6 = vadd.s32 1, %v2394_v5  ;;  %v198_v34 = vshll.u32 %v158_v12, 8 }
  0x19   : > { %vm161_vm0 = vcmp.gt.s32.totalorder %v160_v6, 0 }
  0x1a   : > { %v162_v8 = vsel %vm161_vm0, %v160_v6, 0  ;;  %vm448_vm0 = vcmask 1042432  }
  0x1b   : > { %v164_v11 = vand.u32 31, %v162_v8  ;;  %v163_v13 = vshrl.u32 %v162_v8, 5 }
  0x1d   : > { %v165_v14 = vsub.s32 32, %v164_v11  ;;  %v167_v16 = vshll.u32 %v2638_v15, %v164_v11  ;;  %v170_v18 = vshll.u32 %v2639_v17, %v164_v11  ;;  %v173_v20 = vshll.u32 %v2640_v19, %v164_v11 }
  0x1e   : > { %v176_v22 = vshll.u32 %v2641_v21, %v164_v11  ;;  %v179_v24 = vshll.u32 %v2642_v23, %v164_v11  ;;  %vm182_vm1 = vcmp.lt.s32.totalorder %v163_v13, 1  ;;  %vm185_vm2 = vcmp.lt.s32.totalorder %v163_v13, 4 }
  0x1f   : > { %v166_v26 = vshrl.u32 %v2638_v15, %v165_v14  ;;  %v168_v27 = vshrl.u32 %v2639_v17, %v165_v14  ;;  %v171_v28 = vshrl.u32 %v2640_v19, %v165_v14  ;;  %v174_v29 = vshrl.u32 %v2641_v21, %v165_v14 }
  0x20   : > { %v177_v31 = vshrl.u32 %v2642_v23, %v165_v14  ;;  %v180_v33 = vshrl.u32 %v2643_v32, %v165_v14  ;;  %vm183_vm3 = vcmp.lt.s32.totalorder %v163_v13, 2  ;;  %vm184_vm4 = vcmp.lt.s32.totalorder %v163_v13, 3 }
  0x21   : > { %v169_v35 = vor.u32 %v168_v27, %v167_v16  ;;  %v172_v36 = vor.u32 %v171_v28, %v170_v18  ;;  %v175_v37 = vor.u32 %v174_v29, %v173_v20 }
  0x22   : > { %v178_v38 = vor.u32 %v177_v31, %v176_v22  ;;  %v181_v39 = vor.u32 %v180_v33, %v179_v24 }
  0x23   : > { %v186_v40 = vsel %vm182_vm1, %v166_v26, %v169_v35  ;;  %v187_v41 = vsel %vm185_vm2, %v175_v37, 2102212464  ;;  %v190_v42 = vsel %vm182_vm1, %v169_v35, %v172_v36  ;;  %v194_v43 = vsel %vm182_vm1, %v172_v36, %v175_v37 }
  0x24   : > { %v188_v44 = vsel %vm184_vm4, %v172_v36, %v187_v41  ;;  %v191_v45 = vsel %vm185_vm2, %v178_v38, 920167782  ;;  %v195_v46 = vsel %vm185_vm2, %v181_v39, 1326507024  ;;  %vm454_vm1 = vcmask 1040384  }
  0x25   : > { %v192_v47 = vsel %vm184_vm4, %v175_v37, %v191_v45  ;;  %v196_v48 = vsel %vm184_vm4, %v178_v38, %v195_v46  ;;  %v189_v49 = vsel %vm183_vm3, %v186_v40, %v188_v44  ;;  %vm451_vm2 = vcmask 1045504  }
  0x26   : > { %v193_v50 = vsel %vm183_vm3, %v190_v42, %v192_v47  ;;  %v197_v51 = vsel %vm183_vm3, %v194_v43, %v196_v48  ;;  %v205_v56 = vmul.u32 %v198_v34, %v189_v49  ;;  %vm457_vm3 = vcmask 1043456  }
  0x27   : > { %v2723_v52 = vmul.u32.u64.low %v198_v34, %v197_v51  ;;  %v2724_v53 = vmul.u32.u64.high %v198_v34, %v197_v51, %v2723_v52  ;;  %v2726_v54 = vmul.u32.u64.low %v198_v34, %v193_v50  ;;  %v2727_v55 = vmul.u32.u64.high %v198_v34, %v193_v50, %v2726_v54 }
  0x28   : > { %vm460_vm4 = vcmask 1046528  }
  0x29   : > { %vm207_vm5 = vc.u32 %v2724_v53, %v2726_v54  ;;  %v208_v57 = vadd.s32 1, %v2727_v55  ;;  %v206_v7 = vadd.s32 %v2726_v54, %v2724_v53 }
  0x2b   : > { %v209_v58 = vsel %vm207_vm5, %v208_v57, %v2727_v55  ;;  %vm463_vm5 = vcmask 1041408  }
  0x2c   : > { %v210_v59 = vadd.s32 %v209_v58, %v205_v56 }
  0x2e   : > { %v211_v60 = vadd.s32 536870912, %v210_v59 }
  0x30   : > { %v212_v61 = vshrl.u32 %v211_v60, 30 }
  0x32   : > { %v213_v62 = vshll.u32 %v212_v61, 30  ;;  %v236_v28 = vsub.s32 4, %v212_v61 }
  0x34   : > { %v214_v63 = vsub.s32 %v210_v59, %v213_v62  ;;  %v237_v33 = vsel %vm152_vm7, %v236_v28, %v212_v61 }
  0x35   : > { %v239_v35 = vsel %vm151_vm8, 0, %v237_v33 }
  0x36   : > { %v216_v2 = vsub.s32 0, %v214_v63  ;;  %v243_v36 = vadd.s32 3, %v239_v35  ;;  %v347_v38 = vand.u32 3, %v239_v35 }
  0x38   : > { %v2395_v3 = vmin.u32 %v216_v2, %v214_v63  ;;  %v244_v37 = vand.u32 3, %v243_v36  ;;  %vm352_vm10 = vcmp.eq.s32.totalorder %v347_v38, 2  ;;  %vm349_vm12 = vcmp.eq.s32.totalorder %v347_v38, 0 }
  0x39   : > { %vm348_vm14 = vcmp.lt.s32.totalorder %v347_v38, 2 }
  0x3a   : > { %v218_v5 = vclz %v2395_v3  ;;  %vm249_vm9 = vcmp.eq.s32.totalorder %v244_v37, 2  ;;  %vm246_vm11 = vcmp.eq.s32.totalorder %v244_v37, 0  ;;  %vm245_vm13 = vcmp.lt.s32.totalorder %v244_v37, 2 }
  0x3c   : > { %v2396_v6 = vadd.s32 4294967294, %v218_v5 }
  0x3e   : > { %vm2397_vm6 = vcmp.lt.s32.totalorder %v2396_v6, 0 }
  0x3f   : > { %v221_v8 = vsel %vm2397_vm6, 0, %v2396_v6  ;;  %vm466_vm6 = vcmask 1044480  }
  0x40   : > { %v222_v11 = vsub.s32 32, %v221_v8  ;;  %v223_v12 = vshll.u32 %v214_v63, %v221_v8  ;;  %v226_v13 = vsub.s32 4294967266, %v221_v8 }
  0x42   : > { %v224_v14 = vshrl.u32 %v206_v7, %v222_v11  ;;  %v227_v16 = vadd.s32 127, %v226_v13 }
  0x44   : > { %v225_v18 = vor.u32 %v224_v14, %v223_v12  ;;  %v228_v20 = vshll.u32 %v227_v16, 23 }
  0x46   : > { %v229_v22 = vor.u32 4788187, %v228_v20  ;;  %v232_v24 = vcvt.s32.f32 %v225_v18 }
  0x48   : > { %v230_v26 = vand.u32 2147483647, %v229_v22 }
  0x4a   : > { %v233_v27 = vmul.f32 %v232_v24, %v230_v26 }
  0x4c   : > { %v234_v29 = vxor.u32 2147483648, %v233_v27 }
  0x4e   : > { %v235_v31 = vsel %vm152_vm7, %v234_v29, %v233_v27  ;;  %vm3299_vm7 = vcmask 326656  }
  0x4f   : > { %v238_v34 = vsel %vm151_vm8, %v2682_v1, %v235_v31  ;;  %vm613_vm8 = vcmask 261120  }
  0x50   : > { %2612 = vcosq.f32 %v238_v34 }
  0x51   : > { %2614 = vsinq.f32 %v238_v34 }
  0x5a   : > { %v2613_v39 = vpop.eup %2612 }
  0x5b   : > { %v2615_v40 = vpop.eup %2614  ;;  %v250_v41 = vxor.u32 2147483648, %v2613_v39 }
  0x5c   : > { %v247_v4 = vxor.u32 2147483648, %v2615_v40 }
  0x5d   : > { %v251_v42 = vsel %vm249_vm9, %v250_v41, %v2615_v40  ;;  %v354_v43 = vsel %vm352_vm10, %v250_v41, %v2615_v40 }
  0x5e   : > { %v248_v44 = vsel %vm246_vm11, %v2613_v39, %v247_v4  ;;  %v351_v45 = vsel %vm349_vm12, %v2613_v39, %v247_v4 }
  0x5f   : > { %v252_v46 = vsel %vm245_vm13, %v248_v44, %v251_v42  ;;  %v355_v47 = vsel %vm348_vm14, %v351_v45, %v354_v43 }
  0x60   : > { %v253_v48 = vsel %vm242_vm15, nan, %v252_v46  ;;  %v2738_v49 = vsel %vm242_vm15, nan, %v355_v47 }
  0x61   : > { %v357_v50 = vmul.f32 2.0, %v253_v48  ;;  %v359_v51 = vmul.f32 2.0, %v2738_v49  ;;  %v383_v16 = vcombine.high %v253_v48, %v253_v48  ;;  %v413_v20 = vcombine.high %v2738_v49, %v2738_v49 }
  0x62   : > { %v414_v31 = vrot.slane %v2738_v49, 6 }
  0x63   : > { %v358_v52 = vmul.f32 %v357_v50, %v2738_v49  ;;  %v360_v53 = vmul.f32 %v359_v51, %v2738_v49  ;;  %v415_v39 = vrot.slane %v413_v20, 6 }
  0x65   : > { %v2743_v54 = vadd.f32 -1.0, %v360_v53  ;;  %v362_v55 = vmul.f32 2.0, %v358_v52  ;;  %v386_v7 = vcombine.high %v358_v52, %v358_v52  ;;  %v387_v18 = vrot.slane %v358_v52, 5 }
  0x67   : > { %v363_v56 = vmul.f32 %v2743_v54, %v362_v55  ;;  %v364_v57 = vmul.f32 2.0, %v2743_v54  ;;  %v388_v28 = vrot.slane %v386_v7, 5  ;;  %v449_v38 = vsel %vm448_vm0, %v253_v48, %v387_v18 }
  0x68   : > { %v419_v40 = vcombine.high %v2743_v54, %v2743_v54  ;;  %v420_v41 = vrot.slane %v2743_v54, 3 }
  0x69   : > { %v365_v58 = vmul.f32 %v2743_v54, %v364_v57  ;;  %v367_v59 = vmul.f32 2.0, %v363_v56  ;;  %v392_v5 = vcombine.high %v363_v56, %v363_v56  ;;  %v393_v8 = vrot.slane %v363_v56, 2 }
  0x6a   : > { %v450_v45 = vsel %vm448_vm0, %v383_v16, %v388_v28  ;;  %v421_v55 = vrot.slane %v419_v40, 3 }
  0x6b   : > { %v2403_v60 = vadd.f32 -1.0, %v365_v58  ;;  %v394_v26 = vrot.slane %v392_v5, 2  ;;  %v452_v54 = vsel %vm451_vm2, %v449_v38, %v393_v8 }
  0x6d   : > { %v368_v61 = vmul.f32 %v2403_v60, %v367_v59  ;;  %v369_v62 = vmul.f32 2.0, %v2403_v60  ;;  %v425_v36 = vcombine.high %v2403_v60, %v2403_v60  ;;  %v453_v58 = vsel %vm451_vm2, %v450_v45, %v394_v26 }
  0x6f   : > { %v370_v63 = vmul.f32 %v2403_v60, %v369_v62  ;;  %v372_v2 = vmul.f32 2.0, %v368_v61  ;;  %v398_v6 = vcombine.high %v368_v61, %v368_v61  ;;  %v399_v13 = vrot.slane %v368_v61, 7 }
  0x71   : > { %v2404_v3 = vadd.f32 -1.0, %v370_v63  ;;  %v400_v27 = vrot.slane %v398_v6, 7  ;;  %v455_v35 = vsel %vm454_vm1, %v393_v8, %v399_v13 }
  0x73   : > { %v373_v11 = vmul.f32 %v2404_v3, %v372_v2  ;;  %v374_v12 = vmul.f32 2.0, %v2404_v3  ;;  %v428_v14 = vcombine.high %v2404_v3, %v2404_v3  ;;  %v429_v33 = vrot.slane %v2404_v3, 5 }
  0x74   : > { %v456_v42 = vsel %vm454_vm1, %v394_v26, %v400_v27 }
  0x75   : > { %v375_v22 = vmul.f32 %v2404_v3, %v374_v12  ;;  %v377_v24 = vmul.f32 2.0, %v373_v11  ;;  %v404_v29 = vcombine.low %v373_v11, %v373_v11  ;;  %v430_v37 = vrot.slane %v428_v14, 5 }
  0x76   : > { %v469_v49 = vsel %vm448_vm0, %v2403_v60, %v429_v33  ;;  %v459_v53 = vsel %vm457_vm3, %v456_v42, %v373_v11  ;;  %v446_v14 = vcombine.low %v2682_v1, %v2682_v1 }
  0x77   : > { %v2405_v34 = vadd.f32 -1.0, %v375_v22  ;;  %v458_v46 = vsel %vm457_vm3, %v455_v35, %v404_v29  ;;  %v470_v52 = vsel %vm448_vm0, %v425_v36, %v430_v37 }
  0x79   : > { %v378_v4 = vmul.f32 %v2405_v34, %v377_v24  ;;  %v434_v43 = vcombine.high %v2405_v34, %v2405_v34  ;;  %v379_v44 = vmul.f32 2.0, %v2405_v34  ;;  %v435_v47 = vrot.slane %v2405_v34, 2 }
  0x7b   : > { %v407_v50 = vcombine.high %v378_v4, %v378_v4  ;;  %v408_v48 = vrot.slane %v378_v4, 1  ;;  %v436_v51 = vrot.slane %v434_v43, 2  ;;  %v380_v56 = vmul.f32 %v2405_v34, %v379_v44 }
  0x7c   : > { %v471_v62 = vsel %vm451_vm2, %v469_v49, %v435_v47  ;;  %v2799_v49 = vpop.permute.xlu0 %605 }
  0x7d   : > { %v409_v57 = vrot.slane %v407_v50, 1  ;;  %v461_v59 = vsel %vm460_vm4, %v458_v46, %v408_v48  ;;  %v464_v61 = vsel %vm463_vm5, %v408_v48, %v414_v31  ;;  %v472_v60 = vsel %vm451_vm2, %v470_v52, %v436_v51 }
  0x7e   : > { %v2406_v63 = vadd.f32 -1.0, %v380_v56  ;;  %v2476_v3 = vpack.c.bf16 %v461_v59, %v452_v54  ;;  %v467_v6 = vsel %vm466_vm6, %v464_v61, %v420_v41 }
  0x7f   : > { %v462_v2 = vsel %vm460_vm4, %v459_v53, %v409_v57  ;;  %v465_v5 = vsel %vm463_vm5, %v409_v57, %v415_v39  ;;  %v2480_v20 = vpack.c.bf16 %v471_v62, %v467_v6 }
  0x80   : > { %v2474_v7 = vpack.c.bf16 %v462_v2, %v453_v58  ;;  %v468_v8 = vsel %vm466_vm6, %v465_v5, %v421_v55  ;;  %v440_v11 = vcombine.high %v2406_v63, %v2406_v63  ;;  %v441_v12 = vrot.slane %v2406_v63, 7  ;;  %v2807_v48 = vpop.permute.xlu0 %607 }
  0x81   : > { %v2478_v13 = vpack.c.bf16 %v472_v60, %v468_v8 }
  0x82   : > { %2475 = vmatprep.subr.bf16.mxu0 %v2474_v7  ;;  %v442_v16 = vrot.slane %v440_v11, 7  ;;  %v473_v18 = vsel %vm454_vm1, %v435_v47, %v441_v12  ;;  %v2797_v47 = vpop.permute.xlu1 %609 }
  0x83   : > { %2477 = vmatpush1.bf16.msra.mxu0 %v2476_v3  ;;  %v475_v26 = vsel %vm457_vm3, %v473_v18, %v446_v14 }
  0x84   : > { %2479 = vmatprep.subr.bf16.mxu0 %v2478_v13  ;;  %v474_v22 = vsel %vm454_vm1, %v436_v51, %v442_v16  ;;  %v477_v28 = vsel %vm460_vm4, %v475_v26, 1.0 }
  0x85   : > { %v476_v24 = vsel %vm457_vm3, %v474_v22, %v2682_v1  ;;  %v2644_v1 = vmov 72  }
  0x86   : > { %v478_v27 = vsel %vm460_vm4, %v476_v24, 1.0  ;;  %2607 = vset.pattern.permute.xlu1 %v2644_v1  ;;  %2606 = vset.pattern.permute.xlu0 %v2644_v1  ;;  %v2805_v50 = vpop.permute.xlu1 %611 }
  0x87   : > { %2481 = vmatpush1.bf16.msra.mxu0 %v2480_v20  ;;  %594 = vperm.xlu1 %2607, %v2717_v30  }
  0x88   : > { %500 = vmatprep.subr.mxu0 %v478_v27  ;;  %590 = vperm.xlu0 %2606, %v2691_v9  }
  0x8b   : > { %501 = vmatpush1.msra.mxu0 %v477_v28  ;;  %598 = vperm.xlu1 %2607, %v2696_v10  }
  0x8c   : > { %2407 = vmatmul.mubr.msk.f32.vlgmr.msra.gmra.mrb[0].mxu0 %vm3299_vm7, %v2691_v9  ;;  %602 = vperm.xlu0 %2606, %v2708_v25  }
  0x8d   : > { %562 = vmatprep.mubr.f32.mxu0 %v2636_v0 }
  0x8f   : > { %816 = vrot.lane.b32.xlu1 %v2691_v9, %s2645_s25 }
  0x90   : > { %2408 = vmatmul.mubr.msk.f32.gmra.mrb[2].mxu0 %vm3299_vm7, %v2717_v30 }
  0x91   : > { %568 = vmatprep.mubr.f32.mxu0 %v2636_v0 }
  0x94   : > { %2409 = vmatmul.mubr.msk.f32.gmra.mrb[4].mxu0 %vm3299_vm7, %v2696_v10 }
  0x95   : > { %574 = vmatprep.mubr.f32.mxu0 %v2636_v0 }
  0x98   : > { %2410 = vmatmul.mubr.msk.f32.gmra.mrb[6].mxu0 %vm3299_vm7, %v2708_v25 }
  0x99   : > { %686 = vmatprep.mubr.f32.mxu0 %v2636_v0 }
 0x106   : > { %v2818_v51 = vpop.permute.xlu1 %594 }
 0x107   : > { %v2820_v52 = vpop.permute.xlu0 %590 }
 0x10a   : > { %v2822_v53 = vpop.permute.xlu1 %598 }
 0x10b   : > { %v2825_v59 = vpop.permute.xlu0 %602 }
 0x15f   : > { %v558_v29 = vpop.f32.mrb[0].mxu0 }
 0x160   : > { %v560_v31 = vpop.f32.mrb[1].mxu0  ;;  %v581_v34 = vmax.f32 %v558_v29, 0.0  ;;  %v2835_v29 = vld [vmem:[%s2679_s15 + $0x8] sm:$0x77] }
 0x161   : > { %v582_v37 = vmax.f32 %v560_v31, 0.0  ;;  %v926_v31 = vand.u32 2139095040, %v2835_v29 }
 0x163   : > { %v564_v33 = vpop.f32.mrb[2].mxu0 }
 0x164   : > { %v583_v35 = vmax.f32 %v564_v33, 0.0  ;;  %v566_v36 = vpop.f32.mrb[3].mxu0  ;;  %v927_v33 = vshrl.u32 %v926_v31, 23 }
 0x165   : > { %v584_v38 = vmax.f32 %v566_v36, 0.0 }
 0x166   : > { %v2484_v39 = vpack.c.bf16 %v583_v35, %v581_v34  ;;  %v2420_v34 = vadd.s32 4294967169, %v927_v33 }
 0x167   : > { %v2482_v40 = vpack.c.bf16 %v584_v38, %v582_v37  ;;  %v570_v41 = vpop.f32.mrb[4].mxu0 }
 0x168   : > { %v572_v4 = vpop.f32.mrb[5].mxu0  ;;  %v585_v10 = vmax.f32 %v570_v41, 0.0  ;;  %v933_v35 = vadd.s32 1, %v2420_v34  ;;  %v923_v41 = vand.u32 2147483647, %v2835_v29 }
 0x169   : > { %2483 = vmatprep.subr.bf16.mxu0 %v2482_v40  ;;  %2570 = vmatprep.subr.bf16.mxu1 %v2482_v40  ;;  %v586_v43 = vmax.f32 %v572_v4, 0.0 }
 0x16a   : > { %2485 = vmatpush1.bf16.msra.mxu0 %v2484_v39  ;;  %2572 = vmatpush1.bf16.msra.mxu1 %v2484_v39  ;;  %vm934_vm9 = vcmp.gt.s32.totalorder %v933_v35, 0 }
 0x16b   : > { %v576_v30 = vpop.f32.mrb[6].mxu0  ;;  %v935_v36 = vsel %vm934_vm9, %v933_v35, 0  ;;  %vm925_vm9 = vcmp.lt.s32.totalorder %v2835_v29, 0 }
 0x16c   : > { %v587_v42 = vmax.f32 %v576_v30, 0.0  ;;  %v578_v25 = vpop.f32.mrb[7].mxu0  ;;  %v937_v37 = vand.u32 31, %v935_v36  ;;  %v936_v4 = vshrl.u32 %v935_v36, 5 }
 0x16d   : > { %v588_v44 = vmax.f32 %v578_v25, 0.0 }
 0x16e   : > { %v2488_v45 = vpack.c.bf16 %v587_v42, %v585_v10  ;;  %v938_v38 = vsub.s32 32, %v937_v37  ;;  %v949_v39 = vshll.u32 %v2641_v21, %v937_v37  ;;  %v952_v30 = vshll.u32 %v2642_v23, %v937_v37 }
 0x16f   : > { %v2486_v46 = vpack.c.bf16 %v588_v44, %v586_v43  ;;  %v940_v42 = vshll.u32 %v2638_v15, %v937_v37  ;;  %v943_v43 = vshll.u32 %v2639_v17, %v937_v37  ;;  %vm958_vm10 = vcmp.lt.s32.totalorder %v936_v4, 4 }
 0x170   : > { %v950_v40 = vshrl.u32 %v2642_v23, %v938_v38  ;;  %v953_v10 = vshrl.u32 %v2643_v32, %v938_v38  ;;  %v941_v25 = vshrl.u32 %v2639_v17, %v938_v38  ;;  %v944_v44 = vshrl.u32 %v2640_v19, %v938_v38 }
 0x171   : > { %2487 = vmatprep.subr.bf16.mxu0 %v2486_v46  ;;  %2571 = vmatprep.subr.bf16.mxu1 %v2486_v46  ;;  %v947_v46 = vshrl.u32 %v2641_v21, %v938_v38  ;;  %vm955_vm11 = vcmp.lt.s32.totalorder %v936_v4, 1  ;;  %vm957_vm12 = vcmp.lt.s32.totalorder %v936_v4, 3  ;;  %vm956_vm13 = vcmp.lt.s32.totalorder %v936_v4, 2 }
 0x172   : > { %2489 = vmatpush1.bf16.msra.mxu0 %v2488_v45  ;;  %2573 = vmatpush1.bf16.msra.mxu1 %v2488_v45  ;;  %v946_v45 = vshll.u32 %v2640_v19, %v937_v37 }
 0x175   : > { %2411 = vmatmul.mubr.msk.f32.vlgmr.msra.gmra.mrb[8].mxu0 %vm613_vm8, %v2799_v49  ;;  %2413 = vmatmul.mubr.msk.f32.vlgmr.msra.gmra.mrb[0].mxu1 %vm613_vm8, %v2797_v47 }
 0x176   : > { %692 = vmatprep.mubr.f32.mxu0 %v2636_v0  ;;  %704 = vmatprep.mubr.f32.mxu1 %v2636_v0 }
 0x179   : > { %2412 = vmatmul.mubr.msk.f32.gmra.mrb[10].mxu0 %vm613_vm8, %v2807_v48  ;;  %2414 = vmatmul.mubr.msk.f32.gmra.mrb[2].mxu1 %vm613_vm8, %v2805_v50 }
 0x17a   : > { %783 = vmatprep.mubr.f32.mxu1 %v2636_v0  ;;  %884 = vmatprep.mubr.f32.mxu0 %v2636_v0 }
 0x248   : > { %v688_v54 = vpop.f32.mrb[8].mxu0  ;;  %v700_v55 = vpop.f32.mrb[0].mxu1 }
 0x249   : > { %v690_v56 = vpop.f32.mrb[9].mxu0  ;;  %v702_v57 = vpop.f32.mrb[1].mxu1  ;;  %v701_v58 = vadd.f32 %v700_v55, %v2822_v53  ;;  %v689_v60 = vadd.f32 %v688_v54, %v2820_v52  ;;  %v951_v54 = vor.u32 %v950_v40, %v949_v39  ;;  %v930_v55 = vand.u32 8388607, %v923_v41 }
 0x24a   : > { %v703_v61 = vadd.f32 %v702_v57, %v2822_v53  ;;  %v691_v62 = vadd.f32 %v690_v56, %v2820_v52  ;;  %v954_v56 = vor.u32 %v953_v10, %v952_v30  ;;  %v942_v57 = vor.u32 %v941_v25, %v940_v42 }
 0x24b   : > { %v715_v6 = vmax.f32 %v701_v58, 0.0  ;;  %v711_v14 = vmax.f32 %v689_v60, 0.0  ;;  %v945_v58 = vor.u32 %v944_v44, %v943_v43  ;;  %v964_v60 = vsel %vm958_vm10, %v951_v54, 920167782 }
 0x24c   : > { %v694_v63 = vpop.f32.mrb[10].mxu0  ;;  %v706_v2 = vpop.f32.mrb[2].mxu1  ;;  %v716_v13 = vmax.f32 %v703_v61, 0.0  ;;  %v712_v20 = vmax.f32 %v691_v62, 0.0  ;;  %v948_v61 = vor.u32 %v947_v46, %v946_v45  ;;  %v931_v62 = vor.u32 8388608, %v930_v55 }
 0x24d   : > { %v695_v3 = vadd.f32 %v694_v63, %v2818_v51  ;;  %v707_v5 = vadd.f32 %v706_v2, %v2825_v59  ;;  %v696_v7 = vpop.f32.mrb[11].mxu0  ;;  %v708_v8 = vpop.f32.mrb[3].mxu1  ;;  %v968_v63 = vsel %vm958_vm10, %v954_v56, 1326507024  ;;  %v963_v2 = vsel %vm955_vm11, %v942_v57, %v945_v58 }
 0x24e   : > { %v697_v11 = vadd.f32 %v696_v7, %v2818_v51  ;;  %v709_v12 = vadd.f32 %v708_v8, %v2825_v59  ;;  %v971_v7 = vshll.u32 %v931_v62, 8 }
 0x24f   : > { %v713_v16 = vmax.f32 %v695_v3, 0.0  ;;  %v717_v18 = vmax.f32 %v707_v5, 0.0  ;;  %v965_v3 = vsel %vm957_vm12, %v948_v61, %v964_v60  ;;  %v967_v5 = vsel %vm955_vm11, %v945_v58, %v948_v61 }
 0x250   : > { %v714_v22 = vmax.f32 %v697_v11, 0.0  ;;  %v718_v24 = vmax.f32 %v709_v12, 0.0  ;;  %v966_v8 = vsel %vm956_vm13, %v963_v2, %v965_v3 }
 0x251   : > { %v2492_v26 = vpack.c.bf16 %v713_v16, %v711_v14  ;;  %v2496_v27 = vpack.c.bf16 %v717_v18, %v715_v6  ;;  %v969_v6 = vsel %vm957_vm12, %v951_v54, %v968_v63  ;;  %v939_v14 = vshrl.u32 %v2638_v15, %v938_v38 }
 0x252   : > { %v2490_v28 = vpack.c.bf16 %v714_v22, %v712_v20  ;;  %v2494_v1 = vpack.c.bf16 %v718_v24, %v716_v13  ;;  %v970_v11 = vsel %vm956_vm13, %v967_v5, %v969_v6  ;;  %v960_v20 = vsel %vm958_vm10, %v948_v61, 2102212464 }
 0x253   : > { %v2871_v12 = vmul.u32.u64.low %v971_v7, %v966_v8  ;;  %v2872_v13 = vmul.u32.u64.high %v971_v7, %v966_v8, %v2871_v12  ;;  %v2875_v16 = vmul.u32.u64.low %v971_v7, %v970_v11  ;;  %v2876_v18 = vmul.u32.u64.high %v971_v7, %v970_v11, %v2875_v16 }
 0x254   : > { %2491 = vmatprep.subr.bf16.mxu1 %v2490_v28  ;;  %v959_v22 = vsel %vm955_vm11, %v939_v14, %v942_v57  ;;  %v961_v24 = vsel %vm957_vm12, %v945_v58, %v960_v20  ;;  %v2646_v61 = vmov 105   ;;  %vm924_vm10 = vcmp.le.f32.partialorder %v923_v41, 0.7853982 }
 0x255   : > { %2493 = vmatpush1.bf16.msra.mxu1 %v2492_v26  ;;  %v962_v26 = vsel %vm956_vm13, %v959_v22, %v961_v24  ;;  %vm980_vm14 = vc.u32 %v2876_v18, %v2871_v12  ;;  %v979_v10 = vadd.s32 %v2871_v12, %v2876_v18  ;;  %2608 = vset.pattern.permute.xlu0 %v2646_v61 }
 0x256   : > { %2495 = vmatprep.subr.bf16.mxu1 %v2494_v1  ;;  %v978_v28 = vmul.u32 %v971_v7, %v962_v26  ;;  %892 = vperm.xlu0 %2608, %v2691_v9  }
 0x259   : > { %2497 = vmatpush1.bf16.msra.mxu1 %v2496_v27  ;;  %v981_v27 = vadd.s32 1, %v2872_v13 }
 0x25b   : > { %v982_v1 = vsel %vm980_vm14, %v981_v27, %v2872_v13  ;;  %vm1015_vm14 = vweird.f32 %v2835_v29 }
 0x25c   : > { %2415 = vmatmul.mubr.msk.f32.vlgmr.msra.gmra.mrb[4].mxu1 %vm613_vm8, %v2799_v49  ;;  %v983_v31 = vadd.s32 %v982_v1, %v978_v28 }
 0x25d   : > { %789 = vmatprep.mubr.f32.mxu1 %v2636_v0 }
 0x25e   : > { %v984_v33 = vadd.s32 536870912, %v983_v31 }
 0x260   : > { %2416 = vmatmul.mubr.msk.f32.gmra.mrb[6].mxu1 %vm613_vm8, %v2807_v48  ;;  %v985_v34 = vshrl.u32 %v984_v33, 30 }
 0x261   : > { %795 = vmatprep.mubr.f32.mxu1 %v2636_v0 }
 0x262   : > { %v986_v35 = vshll.u32 %v985_v34, 30  ;;  %v1009_v63 = vsub.s32 4, %v985_v34 }
 0x264   : > { %2417 = vmatmul.mubr.msk.f32.gmra.mrb[8].mxu1 %vm613_vm8, %v2797_v47  ;;  %v987_v36 = vsub.s32 %v983_v31, %v986_v35  ;;  %v1010_v2 = vsel %vm925_vm9, %v1009_v63, %v985_v34 }
 0x265   : > { %801 = vmatprep.mubr.f32.mxu1 %v2636_v0  ;;  %v1012_v3 = vsel %vm924_vm10, 0, %v1010_v2 }
 0x266   : > { %v989_v37 = vsub.s32 0, %v987_v36  ;;  %v1120_v7 = vand.u32 3, %v1012_v3  ;;  %v1016_v13 = vadd.s32 3, %v1012_v3 }
 0x268   : > { %2418 = vmatmul.mubr.msk.f32.gmra.mrb[10].mxu1 %vm613_vm8, %v2805_v50  ;;  %v2421_v38 = vmin.u32 %v989_v37, %v987_v36  ;;  %vm1122_vm11 = vcmp.eq.s32.totalorder %v1120_v7, 0  ;;  %vm1125_vm12 = vcmp.eq.s32.totalorder %v1120_v7, 2  ;;  %vm1121_vm13 = vcmp.lt.s32.totalorder %v1120_v7, 2 }
 0x269   : > { %1406 = vmatprep.mubr.f32.mxu1 %v2636_v0  ;;  %v1017_v14 = vand.u32 3, %v1016_v13 }
 0x26a   : > { %v991_v39 = vclz %v2421_v38 }
 0x26c   : > { %v2422_v40 = vadd.s32 4294967294, %v991_v39 }
 0x26e   : > { %vm2423_vm15 = vcmp.lt.s32.totalorder %v2422_v40, 0 }
 0x26f   : > { %v994_v30 = vsel %vm2423_vm15, 0, %v2422_v40  ;;  %vm1019_vm15 = vcmp.eq.s32.totalorder %v1017_v14, 0 }
 0x270   : > { %v999_v4 = vsub.s32 4294967266, %v994_v30  ;;  %v995_v42 = vsub.s32 32, %v994_v30  ;;  %v996_v43 = vshll.u32 %v987_v36, %v994_v30 }
 0x272   : > { %v1000_v25 = vadd.s32 127, %v999_v4  ;;  %v997_v44 = vshrl.u32 %v979_v10, %v995_v42 }
 0x274   : > { %v1001_v45 = vshll.u32 %v1000_v25, 23  ;;  %v998_v46 = vor.u32 %v997_v44, %v996_v43 }
 0x276   : > { %v1002_v54 = vor.u32 4788187, %v1001_v45  ;;  %v1005_v56 = vcvt.s32.f32 %v998_v46 }
 0x278   : > { %v1003_v55 = vand.u32 2147483647, %v1002_v54 }
 0x27a   : > { %v1006_v57 = vmul.f32 %v1005_v56, %v1003_v55 }
 0x27c   : > { %v1007_v58 = vxor.u32 2147483648, %v1006_v57 }
 0x27e   : > { %v1008_v60 = vsel %vm925_vm9, %v1007_v58, %v1006_v57  ;;  %vm1022_vm9 = vcmp.eq.s32.totalorder %v1017_v14, 2 }
 0x27f   : > { %v1011_v62 = vsel %vm924_vm10, %v2835_v29, %v1008_v60  ;;  %vm1018_vm10 = vcmp.lt.s32.totalorder %v1017_v14, 2 }
 0x280   : > { %2616 = vcosq.f32 %v1011_v62 }
 0x281   : > { %2618 = vsinq.f32 %v1011_v62 }
 0x28a   : > { %v2617_v5 = vpop.eup %2616 }
 0x28b   : > { %v2619_v6 = vpop.eup %2618  ;;  %v1023_v11 = vxor.u32 2147483648, %v2617_v5 }
 0x28c   : > { %v1020_v8 = vxor.u32 2147483648, %v2619_v6 }
 0x28d   : > { %v1127_v12 = vsel %vm1125_vm12, %v1023_v11, %v2619_v6  ;;  %v1024_v22 = vsel %vm1022_vm9, %v1023_v11, %v2619_v6 }
 0x28e   : > { %v1124_v9 = vsel %vm1122_vm11, %v2617_v5, %v1020_v8  ;;  %v1021_v20 = vsel %vm1019_vm15, %v2617_v5, %v1020_v8 }
 0x28f   : > { %v1128_v41 = vsel %vm1121_vm13, %v1124_v9, %v1127_v12  ;;  %v1025_v26 = vsel %vm1018_vm10, %v1021_v20, %v1024_v22 }
 0x290   : > { %v2892_v16 = vsel %vm1015_vm14, nan, %v1128_v41  ;;  %v2898_v28 = vsel %vm1015_vm14, nan, %v1025_v26 }
 0x291   : > { %v1132_v18 = vmul.f32 2.0, %v2892_v16  ;;  %v1130_v1 = vmul.f32 2.0, %v2898_v28  ;;  %v1156_v2 = vcombine.high %v2898_v28, %v2898_v28 }
 0x293   : > { %v1133_v24 = vmul.f32 %v1132_v18, %v2892_v16  ;;  %v2903_v33 = vmul.f32 %v1130_v1, %v2892_v16 }
 0x295   : > { %v2896_v27 = vadd.f32 -1.0, %v1133_v24  ;;  %v1135_v35 = vmul.f32 2.0, %v2903_v33  ;;  %v1159_v55 = vcombine.high %v2903_v33, %v2903_v33  ;;  %v1160_v24 = vrot.slane %v2903_v33, 5 }
 0x297   : > { %v1137_v31 = vmul.f32 2.0, %v2896_v27  ;;  %v2910_v37 = vmul.f32 %v2896_v27, %v1135_v35  ;;  %v1161_v3 = vrot.slane %v1159_v55, 5  ;;  %v1192_v33 = vcombine.high %v2896_v27, %v2896_v27 }
 0x299   : > { %v1138_v34 = vmul.f32 %v2896_v27, %v1137_v31  ;;  %v1140_v39 = vmul.f32 2.0, %v2910_v37  ;;  %v1165_v46 = vcombine.high %v2910_v37, %v2910_v37  ;;  %v1166_v11 = vrot.slane %v2910_v37, 2 }
 0x29a   : > { %v1222_v22 = vsel %vm448_vm0, %v1156_v2, %v1161_v3 }
 0x29b   : > { %v2907_v36 = vadd.f32 -1.0, %v1138_v34  ;;  %v1167_v60 = vrot.slane %v1165_v46, 2  ;;  %v1186_v34 = vcombine.high %v2892_v16, %v2892_v16 }
 0x29d   : > { %v1142_v38 = vmul.f32 2.0, %v2907_v36  ;;  %v1141_v30 = vmul.f32 %v2907_v36, %v1140_v39  ;;  %v1224_v46 = vsel %vm451_vm2, %v1222_v22, %v1167_v60 }
 0x29f   : > { %v1143_v40 = vmul.f32 %v2907_v36, %v1142_v38  ;;  %v1145_v10 = vmul.f32 2.0, %v1141_v30  ;;  %v1171_v54 = vcombine.high %v1141_v30, %v1141_v30  ;;  %v1172_v14 = vrot.slane %v1141_v30, 7 }
 0x2a1   : > { %v2916_v4 = vadd.f32 -1.0, %v1143_v40  ;;  %v1173_v62 = vrot.slane %v1171_v54, 7 }
 0x2a3   : > { %v1147_v42 = vmul.f32 2.0, %v2916_v4  ;;  %v1146_v25 = vmul.f32 %v2916_v4, %v1145_v10  ;;  %v1226_v41 = vsel %vm454_vm1, %v1167_v60, %v1173_v62  ;;  %v1201_v35 = vcombine.high %v2916_v4, %v2916_v4 }
 0x2a4   : > { %v1221_v60 = vsel %vm448_vm0, %v2898_v28, %v1160_v24 }
 0x2a5   : > { %v1148_v43 = vmul.f32 %v2916_v4, %v1147_v42  ;;  %v1150_v45 = vmul.f32 2.0, %v1146_v25  ;;  %v1228_v39 = vsel %vm457_vm3, %v1226_v41, %v1146_v25  ;;  %v1177_v40 = vcombine.low %v1146_v25, %v1146_v25 }
 0x2a6   : > { %v1203_v62 = vrot.slane %v1201_v35, 5  ;;  %v1202_v41 = vrot.slane %v2916_v4, 5  ;;  %v1223_v24 = vsel %vm451_vm2, %v1221_v60, %v1166_v11 }
 0x2a7   : > { %v2921_v44 = vadd.f32 -1.0, %v1148_v43  ;;  %v1225_v43 = vsel %vm454_vm1, %v1166_v11, %v1172_v14 }
 0x2a9   : > { %v1152_v58 = vmul.f32 2.0, %v2921_v44  ;;  %v2929_v61 = vmul.f32 %v2921_v44, %v1150_v45  ;;  %v1207_v55 = vcombine.high %v2921_v44, %v2921_v44  ;;  %v1208_v35 = vrot.slane %v2921_v44, 2 }
 0x2ab   : > { %v1153_v9 = vmul.f32 %v2921_v44, %v1152_v58  ;;  %v1180_v13 = vcombine.high %v2929_v61, %v2929_v61  ;;  %v1181_v54 = vrot.slane %v2929_v61, 1  ;;  %v1198_v58 = vcombine.high %v2907_v36, %v2907_v36 }
 0x2ac   : > { %v1227_v61 = vsel %vm457_vm3, %v1225_v43, %v1177_v40  ;;  %v2979_v40 = vpop.permute.xlu1 %816 }
 0x2ad   : > { %v2432_v30 = vadd.f32 -1.0, %v1153_v9  ;;  %v1182_v42 = vrot.slane %v1180_v13, 1  ;;  %v1209_v13 = vrot.slane %v1207_v55, 2  ;;  %v1236_v28 = vsel %vm448_vm0, %v1198_v58, %v1203_v62 }
 0x2ae   : > { %v2647_v58 = vmov 1966171168  }
 0x2af   : > { %v1213_v3 = vcombine.high %v2432_v30, %v2432_v30  ;;  %v1214_v11 = vrot.slane %v2432_v30, 7  ;;  %v903_v62 = vunpack.c.l.s4 %v2647_v58 }
 0x2b1   : > { %v1239_v30 = vsel %vm454_vm1, %v1208_v35, %v1214_v11 }
 0x32f   : > { %v785_v56 = vpop.f32.mrb[4].mxu1 }
 0x330   : > { %v787_v57 = vpop.f32.mrb[5].mxu1  ;;  %v786_v63 = vadd.f32 %v785_v56, %v2820_v52 }
 0x331   : > { %v788_v5 = vadd.f32 %v787_v57, %v2820_v52  ;;  %v1188_v57 = vrot.slane %v1186_v34, 6 }
 0x332   : > { %v808_v18 = vmax.f32 %v786_v63, 0.0 }
 0x333   : > { %v791_v6 = vpop.f32.mrb[6].mxu1  ;;  %v809_v26 = vmax.f32 %v788_v5, 0.0 }
 0x334   : > { %v792_v7 = vadd.f32 %v791_v6, %v2818_v51  ;;  %v793_v8 = vpop.f32.mrb[7].mxu1  ;;  %v1230_v6 = vsel %vm460_vm4, %v1228_v39, %v1182_v42  ;;  %v1235_v39 = vsel %vm448_vm0, %v2907_v36, %v1202_v41 }
 0x335   : > { %v794_v12 = vadd.f32 %v793_v8, %v2818_v51  ;;  %v1187_v8 = vrot.slane %v2892_v16, 6  ;;  %v2506_v34 = vpack.c.bf16 %v1230_v6, %v1224_v46  ;;  %v1193_v16 = vrot.slane %v2896_v27, 3 }
 0x336   : > { %v810_v20 = vmax.f32 %v792_v7, 0.0  ;;  %v1194_v7 = vrot.slane %v1192_v33, 3  ;;  %v1237_v43 = vsel %vm451_vm2, %v1235_v39, %v1208_v35  ;;  %v1219_v33 = vcombine.low %v2835_v29, %v2835_v29 }
 0x337   : > { %v811_v1 = vmax.f32 %v794_v12, 0.0  ;;  %v797_v31 = vpop.f32.mrb[8].mxu1 }
 0x338   : > { %v2500_v37 = vpack.c.bf16 %v810_v20, %v808_v18  ;;  %v799_v38 = vpop.f32.mrb[9].mxu1  ;;  %v798_v45 = vadd.f32 %v797_v31, %v2822_v53  ;;  %v1232_v20 = vsel %vm463_vm5, %v1182_v42, %v1188_v57  ;;  %v3022_v57 = vld [vmem:[%s3297_s1 + $0x18] sm:$0xff] }
 0x339   : > { %v2498_v10 = vpack.c.bf16 %v811_v1, %v809_v26  ;;  %v800_v56 = vadd.f32 %v799_v38, %v2822_v53  ;;  %v1229_v26 = vsel %vm460_vm4, %v1227_v61, %v1181_v54  ;;  %v1215_v1 = vrot.slane %v1213_v3, 7 }
 0x33a   : > { %v812_v9 = vmax.f32 %v798_v45, 0.0  ;;  %v1234_v4 = vsel %vm466_vm6, %v1232_v20, %v1194_v7  ;;  %v1231_v38 = vsel %vm463_vm5, %v1181_v54, %v1187_v8  ;;  %v1241_v54 = vsel %vm457_vm3, %v1239_v30, %v1219_v33 }
 0x33b   : > { %v803_v25 = vpop.f32.mrb[10].mxu1  ;;  %2499 = vmatprep.subr.bf16.mxu0 %v2498_v10  ;;  %v813_v14 = vmax.f32 %v800_v56, 0.0  ;;  %v2508_v10 = vpack.c.bf16 %v1229_v26, %v1223_v24  ;;  %v1240_v42 = vsel %vm454_vm1, %v1209_v13, %v1215_v1  ;;  %v1233_v44 = vsel %vm466_vm6, %v1231_v38, %v1193_v16  ;;  %v3006_v56 = vld [vmem:[%s3297_s1 + $0x8] sm:$0xff] }
 0x33c   : > { %v804_v63 = vadd.f32 %v803_v25, %v2825_v59  ;;  %v805_v2 = vpop.f32.mrb[11].mxu1  ;;  %2501 = vmatpush1.bf16.msra.mxu0 %v2500_v37  ;;  %v1238_v37 = vsel %vm451_vm2, %v1236_v28, %v1209_v13  ;;  %v1242_v36 = vsel %vm457_vm3, %v1240_v42, %v2835_v29  ;;  %v2512_v45 = vpack.c.bf16 %v1237_v43, %v1233_v44  ;;  %v2998_v29 = vld [vmem:[%s3297_s1] sm:$0xff]  ;;  %v3014_v25 = vld [vmem:[%s3297_s1 + $0x10] sm:$0xff] }
 0x33d   : > { %v806_v5 = vadd.f32 %v805_v2, %v2825_v59  ;;  %v2510_v27 = vpack.c.bf16 %v1238_v37, %v1234_v4  ;;  %v1244_v46 = vsel %vm460_vm4, %v1242_v36, 1.0  ;;  %v1243_v55 = vsel %vm460_vm4, %v1241_v54, 1.0  ;;  %v3027_v2 = vpop.permute.xlu0 %892 }
 0x33e   : > { %v814_v12 = vmax.f32 %v804_v63, 0.0  ;;  %v905_v63 = vlaneseq  ;;  %v904_v61 = vunpack.c.0.s8 %v903_v62 }
 0x33f   : > { %v815_v18 = vmax.f32 %v806_v5, 0.0 }
 0x340   : > { %v2504_v22 = vpack.c.bf16 %v814_v12, %v812_v9  ;;  %v906_v3 = vshrl.u32 %v905_v63, 7  ;;  %vm3040_vm11 = vcmp.lt.s32.totalorder %v905_v63, 256 }
 0x341   : > { %v2502_v31 = vpack.c.bf16 %v815_v18, %v813_v14 }
 0x342   : > { %v3031_v12 = vsub.s32 %v904_v61, %v906_v3 }
 0x343   : > { %2503 = vmatprep.subr.bf16.mxu0 %v2502_v31 }
 0x344   : > { %2505 = vmatpush1.bf16.msra.mxu0 %v2504_v22 }
 0x345   : > { %2507 = vmatprep.subr.bf16.mxu0 %v2506_v34 }
 0x347   : > { %2419 = vmatmul.mubr.msk.f32.vlgmr.msra.gmra.mrb[12].mxu0 %vm613_vm8, %v2979_v40 }
 0x348   : > { %2509 = vmatpush1.bf16.msra.mxu0 %v2508_v10  ;;  %1309 = vmatprep.mubr.f32.mxu0 %v2636_v0 }
 0x349   : > { %2511 = vmatprep.subr.bf16.mxu0 %v2510_v27 }
 0x34c   : > { %2513 = vmatpush1.bf16.msra.mxu0 %v2512_v45 }
 0x34d   : > { %1253 = vmatprep.subr.mxu0 %v1244_v46 }
 0x350   : > { %1254 = vmatpush1.msra.mxu0 %v1243_v55 }
 0x351   : > { %2433 = vmatmul.mubr.msk.f32.vlgmr.msra.gmra.mrb[14].mxu0 %vm3299_vm7, %v2998_v29 }
 0x352   : > { %1315 = vmatprep.mubr.f32.mxu0 %v2636_v0 }
 0x355   : > { %2434 = vmatmul.mubr.msk.f32.gmra.mrb[16].mxu0 %vm3299_vm7, %v3006_v56 }
 0x356   : > { %1321 = vmatprep.mubr.f32.mxu0 %v2636_v0 }
 0x359   : > { %2435 = vmatmul.mubr.msk.f32.gmra.mrb[18].mxu0 %vm3299_vm7, %v3014_v25 }
 0x35a   : > { %1327 = vmatprep.mubr.f32.mxu0 %v2636_v0 }
 0x35d   : > { %2436 = vmatmul.mubr.msk.f32.gmra.mrb[20].mxu0 %vm3299_vm7, %v3022_v57 }
 0x35e   : > { %1503 = vmatprep.mubr.f32.mxu0 %v2636_v0 }
 0x41a   : > { %v886_v60 = vpop.f32.mrb[12].mxu0 }
 0x41b   : > { %v888_v5 = vpop.f32.mrb[13].mxu0  ;;  %v895_v6 = vadd.f32 %v3027_v2, %v886_v60 }
 0x41c   : > { %v896_v7 = vadd.f32 %v3027_v2, %v888_v5 }
 0x41d   : > { %v897_v8 = vmax.f32 %v895_v6, 0.0 }
 0x41e   : > { %v898_v9 = vmax.f32 %v896_v7, 0.0 }
 0x420   : > { %v901_v13 = vcombine.low %v897_v8, %v898_v9 }
 0x422   : > { %v908_v41 = vrot.slane %v901_v13, %v3031_v12 }
 0x424   : > { %v915_v18 = vrot.slane %v908_v41, %v3031_v12  ;;  %v1311_v20 = vpop.f32.mrb[14].mxu0 }
 0x425   : > { %v1313_v28 = vpop.f32.mrb[15].mxu0  ;;  %v1334_v24 = vmax.f32 %v1311_v20, 0.0 }
 0x426   : > { %921 = vst.msk [vmem:[%s3038_s8] sm:$0x3] %vm3040_vm11, %v915_v18  ;;  %v1335_v31 = vmax.f32 %v1313_v28, 0.0 }
 0x428   : > { %v1317_v22 = vpop.f32.mrb[16].mxu0 }
 0x429   : > { %v1336_v26 = vmax.f32 %v1317_v22, 0.0  ;;  %v1319_v1 = vpop.f32.mrb[17].mxu0 }
 0x42a   : > { %v1337_v34 = vmax.f32 %v1319_v1, 0.0 }
 0x42b   : > { %v2516_v16 = vpack.c.bf16 %v1336_v26, %v1334_v24 }
 0x42c   : > { %v2514_v35 = vpack.c.bf16 %v1337_v34, %v1335_v31  ;;  %v1323_v4 = vpop.f32.mrb[18].mxu0  ;;  %v3069_v34 = vld [vmem:[%s2679_s15 + $0x10] sm:$0x77] }
 0x42d   : > { %v1325_v37 = vpop.f32.mrb[19].mxu0  ;;  %v1338_v39 = vmax.f32 %v1323_v4, 0.0 }
 0x42e   : > { %2515 = vmatprep.subr.bf16.mxu1 %v2514_v35  ;;  %v1339_v42 = vmax.f32 %v1325_v37, 0.0 }
 0x42f   : > { %2517 = vmatpush1.bf16.msra.mxu1 %v2516_v16  ;;  %v1634_v16 = vand.u32 2139095040, %v3069_v34 }
 0x430   : > { %v1329_v38 = vpop.f32.mrb[20].mxu0 }
 0x431   : > { %v1340_v11 = vmax.f32 %v1329_v38, 0.0  ;;  %v1331_v10 = vpop.f32.mrb[21].mxu0  ;;  %v1635_v35 = vshrl.u32 %v1634_v16, 23 }
 0x432   : > { %v1341_v27 = vmax.f32 %v1331_v10, 0.0 }
 0x433   : > { %v2520_v44 = vpack.c.bf16 %v1340_v11, %v1338_v39  ;;  %v2446_v4 = vadd.s32 4294967169, %v1635_v35 }
 0x434   : > { %v2518_v43 = vpack.c.bf16 %v1341_v27, %v1339_v42  ;;  %v1631_v27 = vand.u32 2147483647, %v3069_v34 }
 0x435   : > { %v1641_v37 = vadd.s32 1, %v2446_v4 }
 0x436   : > { %2519 = vmatprep.subr.bf16.mxu1 %v2518_v43 }
 0x437   : > { %2521 = vmatpush1.bf16.msra.mxu1 %v2520_v44  ;;  %vm1642_vm12 = vcmp.gt.s32.totalorder %v1641_v37, 0 }
 0x438   : > { %v1643_v38 = vsel %vm1642_vm12, %v1641_v37, 0 }
 0x439   : > { %v1645_v39 = vand.u32 31, %v1643_v38  ;;  %v1644_v44 = vshrl.u32 %v1643_v38, 5 }
 0x43a   : > { %2437 = vmatmul.mubr.msk.f32.vlgmr.msra.gmra.mrb[12].mxu1 %vm613_vm8, %v2799_v49 }
 0x43b   : > { %1412 = vmatprep.mubr.f32.mxu1 %v2636_v0  ;;  %v1646_v11 = vsub.s32 32, %v1645_v39  ;;  %v1657_v10 = vshll.u32 %v2641_v21, %v1645_v39  ;;  %v1660_v43 = vshll.u32 %v2642_v23, %v1645_v39  ;;  %vm1666_vm13 = vcmp.lt.s32.totalorder %v1644_v44, 4 }
 0x43c   : > { %vm1663_vm14 = vcmp.lt.s32.totalorder %v1644_v44, 1  ;;  %vm1665_vm15 = vcmp.lt.s32.totalorder %v1644_v44, 3  ;;  %vm1664_vm9 = vcmp.lt.s32.totalorder %v1644_v44, 2 }
 0x43d   : > { %v1658_v42 = vshrl.u32 %v2642_v23, %v1646_v11 }
 0x43e   : > { %2438 = vmatmul.mubr.msk.f32.gmra.mrb[14].mxu1 %vm613_vm8, %v2807_v48 }
 0x43f   : > { %1418 = vmatprep.mubr.f32.mxu1 %v2636_v0 }
 0x442   : > { %2439 = vmatmul.mubr.msk.f32.gmra.mrb[16].mxu1 %vm613_vm8, %v2797_v47 }
 0x443   : > { %1424 = vmatprep.mubr.f32.mxu1 %v2636_v0 }
 0x446   : > { %2440 = vmatmul.mubr.msk.f32.gmra.mrb[18].mxu1 %vm613_vm8, %v2805_v50 }
 0x447   : > { %1600 = vmatprep.mubr.f32.mxu1 %v2636_v0 }
 0x50d   : > { %v1408_v33 = vpop.f32.mrb[12].mxu1 }
 0x50e   : > { %v1410_v36 = vpop.f32.mrb[13].mxu1  ;;  %v1409_v30 = vadd.f32 %v1408_v33, %v2820_v52  ;;  %v1661_v33 = vshrl.u32 %v2643_v32, %v1646_v11 }
 0x50f   : > { %v1411_v45 = vadd.f32 %v1410_v36, %v2820_v52  ;;  %v1648_v36 = vshll.u32 %v2638_v15, %v1645_v39 }
 0x510   : > { %v1431_v62 = vmax.f32 %v1409_v30, 0.0  ;;  %v1649_v30 = vshrl.u32 %v2639_v17, %v1646_v11 }
 0x511   : > { %v1414_v46 = vpop.f32.mrb[14].mxu1  ;;  %v1432_v60 = vmax.f32 %v1411_v45, 0.0  ;;  %v1651_v45 = vshll.u32 %v2639_v17, %v1645_v39 }
 0x512   : > { %v1415_v54 = vadd.f32 %v1414_v46, %v2818_v51  ;;  %v1416_v55 = vpop.f32.mrb[15].mxu1  ;;  %v1652_v46 = vshrl.u32 %v2640_v19, %v1646_v11  ;;  %v1650_v23 = vor.u32 %v1649_v30, %v1648_v36 }
 0x513   : > { %v1417_v58 = vadd.f32 %v1416_v55, %v2818_v51  ;;  %v1655_v55 = vshrl.u32 %v2641_v21, %v1646_v11 }
 0x514   : > { %v1433_v63 = vmax.f32 %v1415_v54, 0.0  ;;  %v1654_v54 = vshll.u32 %v2640_v19, %v1645_v39  ;;  %v1653_v32 = vor.u32 %v1652_v46, %v1651_v45 }
 0x515   : > { %v1434_v61 = vmax.f32 %v1417_v58, 0.0  ;;  %v1420_v3 = vpop.f32.mrb[16].mxu1  ;;  %v1659_v58 = vor.u32 %v1658_v42, %v1657_v10 }
 0x516   : > { %v2524_v5 = vpack.c.bf16 %v1433_v63, %v1431_v62  ;;  %v1422_v6 = vpop.f32.mrb[17].mxu1  ;;  %v1421_v8 = vadd.f32 %v1420_v3, %v2822_v53  ;;  %v1638_v62 = vand.u32 8388607, %v1631_v27  ;;  %v1662_v63 = vor.u32 %v1661_v33, %v1660_v43 }
 0x517   : > { %v2522_v7 = vpack.c.bf16 %v1434_v61, %v1432_v60  ;;  %v1423_v9 = vadd.f32 %v1422_v6, %v2822_v53  ;;  %v1656_v60 = vor.u32 %v1655_v55, %v1654_v54  ;;  %v1672_v61 = vsel %vm1666_vm13, %v1659_v58, 920167782 }
 0x518   : > { %v1435_v28 = vmax.f32 %v1421_v8, 0.0  ;;  %v1639_v17 = vor.u32 8388608, %v1638_v62  ;;  %v1676_v3 = vsel %vm1666_vm13, %v1662_v63, 1326507024  ;;  %v1671_v19 = vsel %vm1663_vm14, %v1650_v23, %v1653_v32 }
 0x519   : > { %v1426_v13 = vpop.f32.mrb[18].mxu1  ;;  %2523 = vmatprep.subr.bf16.mxu0 %v2522_v7  ;;  %v1436_v24 = vmax.f32 %v1423_v9, 0.0  ;;  %v1673_v21 = vsel %vm1665_vm15, %v1656_v60, %v1672_v61  ;;  %v1677_v6 = vsel %vm1665_vm15, %v1659_v58, %v1676_v3 }
 0x51a   : > { %v1427_v41 = vadd.f32 %v1426_v13, %v2825_v59  ;;  %v1428_v18 = vpop.f32.mrb[19].mxu1  ;;  %2525 = vmatpush1.bf16.msra.mxu0 %v2524_v5  ;;  %v1675_v5 = vsel %vm1663_vm14, %v1653_v32, %v1656_v60  ;;  %v1679_v7 = vshll.u32 %v1639_v17, 8  ;;  %v1674_v8 = vsel %vm1664_vm9, %v1671_v19, %v1673_v21 }
 0x51b   : > { %v1429_v20 = vadd.f32 %v1428_v18, %v2825_v59  ;;  %v1678_v9 = vsel %vm1664_vm9, %v1675_v5, %v1677_v6  ;;  %v1647_v18 = vshrl.u32 %v2638_v15, %v1646_v11 }
 0x51c   : > { %v1437_v22 = vmax.f32 %v1427_v41, 0.0  ;;  %v3105_v13 = vmul.u32.u64.low %v1679_v7, %v1674_v8  ;;  %v3106_v41 = vmul.u32.u64.high %v1679_v7, %v1674_v8, %v3105_v13 }
 0x51d   : > { %v1438_v26 = vmax.f32 %v1429_v20, 0.0 }
 0x51e   : > { %v2528_v1 = vpack.c.bf16 %v1437_v22, %v1435_v28  ;;  %v3109_v20 = vmul.u32.u64.low %v1679_v7, %v1678_v9  ;;  %v3110_v28 = vmul.u32.u64.high %v1679_v7, %v1678_v9, %v3109_v20  ;;  %v1668_v22 = vsel %vm1666_vm13, %v1656_v60, 2102212464 }
 0x51f   : > { %v2526_v31 = vpack.c.bf16 %v1438_v26, %v1436_v24  ;;  %v1667_v24 = vsel %vm1663_vm14, %v1647_v18, %v1650_v23  ;;  %v1669_v26 = vsel %vm1665_vm15, %v1653_v32, %v1668_v22  ;;  %vm1633_vm13 = vcmp.lt.s32.totalorder %v3069_v34, 0 }
 0x520   : > { %vm1688_vm10 = vc.u32 %v3110_v28, %v3105_v13  ;;  %v1687_v36 = vadd.s32 %v3105_v13, %v3110_v28  ;;  %vm1632_vm14 = vcmp.le.f32.partialorder %v1631_v27, 0.7853982 }
 0x521   : > { %2527 = vmatprep.subr.bf16.mxu0 %v2526_v31  ;;  %v1689_v31 = vadd.s32 1, %v3106_v41 }
 0x522   : > { %2529 = vmatpush1.bf16.msra.mxu0 %v2528_v1  ;;  %v1670_v1 = vsel %vm1664_vm9, %v1667_v24, %v1669_v26 }
 0x523   : > { %v1686_v16 = vmul.u32 %v1679_v7, %v1670_v1  ;;  %v1690_v35 = vsel %vm1688_vm10, %v1689_v31, %v3106_v41 }
 0x525   : > { %2441 = vmatmul.mubr.msk.f32.vlgmr.msra.gmra.mrb[22].mxu0 %vm613_vm8, %v2799_v49  ;;  %v1691_v4 = vadd.s32 %v1690_v35, %v1686_v16 }
 0x526   : > { %1509 = vmatprep.mubr.f32.mxu0 %v2636_v0 }
 0x527   : > { %v1692_v15 = vadd.s32 536870912, %v1691_v4 }
 0x529   : > { %2442 = vmatmul.mubr.msk.f32.gmra.mrb[24].mxu0 %vm613_vm8, %v2807_v48  ;;  %v1693_v37 = vshrl.u32 %v1692_v15, 30 }
 0x52a   : > { %1515 = vmatprep.mubr.f32.mxu0 %v2636_v0 }
 0x52b   : > { %v1694_v38 = vshll.u32 %v1693_v37, 30  ;;  %v1717_v3 = vsub.s32 4, %v1693_v37 }
 0x52d   : > { %2443 = vmatmul.mubr.msk.f32.gmra.mrb[26].mxu0 %vm613_vm8, %v2797_v47  ;;  %v1695_v39 = vsub.s32 %v1691_v4, %v1694_v38  ;;  %v1718_v19 = vsel %vm1633_vm13, %v1717_v3, %v1693_v37 }
 0x52e   : > { %1521 = vmatprep.mubr.f32.mxu0 %v2636_v0  ;;  %v1720_v21 = vsel %vm1632_vm14, 0, %v1718_v19 }
 0x52f   : > { %v1697_v11 = vsub.s32 0, %v1695_v39  ;;  %v1828_v7 = vand.u32 3, %v1720_v21  ;;  %v1724_v18 = vadd.s32 3, %v1720_v21 }
 0x531   : > { %2444 = vmatmul.mubr.msk.f32.gmra.mrb[28].mxu0 %vm613_vm8, %v2805_v50  ;;  %v2447_v10 = vmin.u32 %v1697_v11, %v1695_v39  ;;  %vm1830_vm15 = vcmp.eq.s32.totalorder %v1828_v7, 0  ;;  %vm1833_vm9 = vcmp.eq.s32.totalorder %v1828_v7, 2  ;;  %vm1829_vm10 = vcmp.lt.s32.totalorder %v1828_v7, 2 }
 0x532   : > { %2114 = vmatprep.mubr.f32.mxu0 %v2636_v0  ;;  %v1725_v20 = vand.u32 3, %v1724_v18 }
 0x533   : > { %v1699_v42 = vclz %v2447_v10 }
 0x534   : > { %vm1727_vm7 = vcmp.eq.s32.totalorder %v1725_v20, 0 }
 0x535   : > { %v2448_v43 = vadd.s32 4294967294, %v1699_v42 }
 0x537   : > { %vm2449_vm12 = vcmp.lt.s32.totalorder %v2448_v43, 0 }
 0x538   : > { %v1702_v33 = vsel %vm2449_vm12, 0, %v2448_v43  ;;  %vm1723_vm12 = vweird.f32 %v3069_v34 }
 0x539   : > { %v1707_v44 = vsub.s32 4294967266, %v1702_v33  ;;  %v1703_v30 = vsub.s32 32, %v1702_v33  ;;  %v1704_v46 = vshll.u32 %v1695_v39, %v1702_v33 }
 0x53b   : > { %v1708_v45 = vadd.s32 127, %v1707_v44  ;;  %v1705_v54 = vshrl.u32 %v1687_v36, %v1703_v30 }
 0x53d   : > { %v1709_v55 = vshll.u32 %v1708_v45, 23  ;;  %v1706_v58 = vor.u32 %v1705_v54, %v1704_v46 }
 0x53f   : > { %v1710_v62 = vor.u32 4788187, %v1709_v55  ;;  %v1713_v23 = vcvt.s32.f32 %v1706_v58 }
 0x541   : > { %v1711_v63 = vand.u32 2147483647, %v1710_v62 }
 0x543   : > { %v1714_v32 = vmul.f32 %v1713_v23, %v1711_v63 }
 0x545   : > { %v1715_v60 = vxor.u32 2147483648, %v1714_v32 }
 0x547   : > { %v1716_v61 = vsel %vm1633_vm13, %v1715_v60, %v1714_v32  ;;  %vm1730_vm13 = vcmp.eq.s32.totalorder %v1725_v20, 2 }
 0x548   : > { %v1719_v17 = vsel %vm1632_vm14, %v3069_v34, %v1716_v61  ;;  %vm1726_vm14 = vcmp.lt.s32.totalorder %v1725_v20, 2 }
 0x549   : > { %2620 = vcosq.f32 %v1719_v17 }
 0x54a   : > { %2622 = vsinq.f32 %v1719_v17 }
 0x553   : > { %v2621_v5 = vpop.eup %2620 }
 0x554   : > { %v2623_v6 = vpop.eup %2622  ;;  %v1731_v9 = vxor.u32 2147483648, %v2621_v5 }
 0x555   : > { %v1728_v8 = vxor.u32 2147483648, %v2623_v6 }
 0x556   : > { %v1835_v41 = vsel %vm1833_vm9, %v1731_v9, %v2623_v6  ;;  %v1732_v26 = vsel %vm1730_vm13, %v1731_v9, %v2623_v6 }
 0x557   : > { %v1832_v13 = vsel %vm1830_vm15, %v2621_v5, %v1728_v8  ;;  %v1729_v24 = vsel %vm1727_vm7, %v2621_v5, %v1728_v8 }
 0x558   : > { %v1836_v27 = vsel %vm1829_vm10, %v1832_v13, %v1835_v41  ;;  %v1733_v31 = vsel %vm1726_vm14, %v1729_v24, %v1732_v26 }
 0x559   : > { %v3125_v28 = vsel %vm1723_vm12, nan, %v1836_v27  ;;  %v3131_v35 = vsel %vm1723_vm12, nan, %v1733_v31 }
 0x55a   : > { %v1840_v22 = vmul.f32 2.0, %v3125_v28  ;;  %v1838_v4 = vmul.f32 2.0, %v3131_v35  ;;  %v1864_v5 = vcombine.high %v3131_v35, %v3131_v35 }
 0x55c   : > { %v1841_v1 = vmul.f32 %v1840_v22, %v3125_v28  ;;  %v3136_v37 = vmul.f32 %v1838_v4, %v3125_v28 }
 0x55e   : > { %v3129_v16 = vadd.f32 -1.0, %v1841_v1  ;;  %v1843_v39 = vmul.f32 2.0, %v3136_v37  ;;  %v1867_v23 = vcombine.high %v3136_v37, %v3136_v37  ;;  %v1868_v4 = vrot.slane %v3136_v37, 5 }
 0x560   : > { %v1845_v15 = vmul.f32 2.0, %v3129_v16  ;;  %v3143_v10 = vmul.f32 %v3129_v16, %v1843_v39  ;;  %v1869_v6 = vrot.slane %v1867_v23, 5  ;;  %v1900_v37 = vcombine.high %v3129_v16, %v3129_v16 }
 0x562   : > { %v1846_v38 = vmul.f32 %v3129_v16, %v1845_v15  ;;  %v1848_v43 = vmul.f32 2.0, %v3143_v10  ;;  %v1873_v62 = vcombine.high %v3143_v10, %v3143_v10  ;;  %v1874_v41 = vrot.slane %v3143_v10, 2 }
 0x563   : > { %v1930_v31 = vsel %vm448_vm0, %v1864_v5, %v1869_v6  ;;  %v1894_v10 = vcombine.high %v3125_v28, %v3125_v28 }
 0x564   : > { %v3140_v11 = vadd.f32 -1.0, %v1846_v38  ;;  %v1875_v3 = vrot.slane %v1873_v62, 2 }
 0x566   : > { %v1850_v42 = vmul.f32 2.0, %v3140_v11  ;;  %v1849_v44 = vmul.f32 %v3140_v11, %v1848_v43  ;;  %v1932_v23 = vsel %vm451_vm2, %v1930_v31, %v1875_v3 }
 0x568   : > { %v1851_v33 = vmul.f32 %v3140_v11, %v1850_v42  ;;  %v1853_v30 = vmul.f32 2.0, %v1849_v44  ;;  %v1879_v63 = vcombine.high %v1849_v44, %v1849_v44  ;;  %v1880_v24 = vrot.slane %v1849_v44, 7 }
 0x56a   : > { %v3149_v36 = vadd.f32 -1.0, %v1851_v33  ;;  %v1881_v19 = vrot.slane %v1879_v63, 7  ;;  %v1933_v62 = vsel %vm454_vm1, %v1874_v41, %v1880_v24 }
 0x56c   : > { %v1855_v45 = vmul.f32 2.0, %v3149_v36  ;;  %v1854_v46 = vmul.f32 %v3149_v36, %v1853_v30  ;;  %v1934_v22 = vsel %vm454_vm1, %v1875_v3, %v1881_v19  ;;  %v1909_v42 = vcombine.high %v3149_v36, %v3149_v36 }
 0x56d   : > { %v1896_v19 = vrot.slane %v1894_v10, 6  ;;  %v1929_v3 = vsel %vm448_vm0, %v3131_v35, %v1868_v4 }
 0x56e   : > { %v1856_v54 = vmul.f32 %v3149_v36, %v1855_v45  ;;  %v1858_v58 = vmul.f32 2.0, %v1854_v46  ;;  %v1936_v30 = vsel %vm457_vm3, %v1934_v22, %v1854_v46  ;;  %v1885_v44 = vcombine.low %v1854_v46, %v1854_v46 }
 0x56f   : > { %v1911_v5 = vrot.slane %v1909_v42, 5 }
 0x570   : > { %v3154_v55 = vadd.f32 -1.0, %v1856_v54 }
 0x572   : > { %v1860_v61 = vmul.f32 2.0, %v3154_v55  ;;  %v3162_v17 = vmul.f32 %v3154_v55, %v1858_v58 }
 0x574   : > { %v1861_v18 = vmul.f32 %v3154_v55, %v1860_v61  ;;  %v1888_v20 = vcombine.high %v3162_v17, %v3162_v17 }
 0x576   : > { %v2458_v45 = vadd.f32 -1.0, %v1861_v18  ;;  %v1890_v58 = vrot.slane %v1888_v20, 1  ;;  %v1902_v18 = vrot.slane %v1900_v37, 3 }
 0x5f8   : > { %v1505_v32 = vpop.f32.mrb[22].mxu0 }
 0x5f9   : > { %v1507_v60 = vpop.f32.mrb[23].mxu0  ;;  %v1506_v21 = vadd.f32 %v1505_v32, %v2820_v52  ;;  %v1889_v32 = vrot.slane %v3162_v17, 1  ;;  %v1935_v17 = vsel %vm457_vm3, %v1933_v62, %v1885_v44 }
 0x5fa   : > { %v1508_v7 = vadd.f32 %v1507_v60, %v2820_v52  ;;  %v1915_v60 = vcombine.high %v3154_v55, %v3154_v55 }
 0x5fb   : > { %v1528_v26 = vmax.f32 %v1506_v21, 0.0  ;;  %v1906_v21 = vcombine.high %v3140_v11, %v3140_v11 }
 0x5fc   : > { %v1511_v8 = vpop.f32.mrb[24].mxu0  ;;  %v1529_v15 = vmax.f32 %v1508_v7, 0.0  ;;  %v1917_v24 = vrot.slane %v1915_v60, 2 }
 0x5fd   : > { %v1512_v9 = vadd.f32 %v1511_v8, %v2818_v51  ;;  %v1513_v13 = vpop.f32.mrb[25].mxu0  ;;  %v1921_v8 = vcombine.high %v2458_v45, %v2458_v45  ;;  %v1944_v35 = vsel %vm448_vm0, %v1906_v21, %v1911_v5 }
 0x5fe   : > { %v1514_v27 = vadd.f32 %v1513_v13, %v2818_v51  ;;  %v1938_v13 = vsel %vm460_vm4, %v1936_v30, %v1890_v58  ;;  %v1946_v30 = vsel %vm451_vm2, %v1944_v35, %v1917_v24 }
 0x5ff   : > { %v1530_v1 = vmax.f32 %v1512_v9, 0.0  ;;  %v1923_v10 = vrot.slane %v1921_v8, 7 }
 0x600   : > { %v1531_v38 = vmax.f32 %v1514_v27, 0.0  ;;  %v1517_v39 = vpop.f32.mrb[26].mxu0  ;;  %v1895_v27 = vrot.slane %v3125_v28, 6  ;;  %v1901_v28 = vrot.slane %v3129_v16, 3 }
 0x601   : > { %v2532_v43 = vpack.c.bf16 %v1530_v1, %v1528_v26  ;;  %v1519_v33 = vpop.f32.mrb[27].mxu0  ;;  %v1518_v63 = vadd.f32 %v1517_v39, %v2822_v53  ;;  %v1910_v26 = vrot.slane %v3149_v36, 5  ;;  %v1937_v39 = vsel %vm460_vm4, %v1935_v17, %v1889_v32 }
 0x602   : > { %v2530_v54 = vpack.c.bf16 %v1531_v38, %v1529_v15  ;;  %v1520_v61 = vadd.f32 %v1519_v33, %v2822_v53  ;;  %v1940_v15 = vsel %vm463_vm5, %v1890_v58, %v1896_v19  ;;  %v1931_v38 = vsel %vm451_vm2, %v1929_v3, %v1874_v41 }
 0x603   : > { %v1532_v20 = vmax.f32 %v1518_v63, 0.0  ;;  %v1916_v33 = vrot.slane %v3154_v55, 2  ;;  %v1942_v36 = vsel %vm466_vm6, %v1940_v15, %v1902_v18  ;;  %v1939_v44 = vsel %vm463_vm5, %v1889_v32, %v1895_v27 }
 0x604   : > { %v1523_v46 = vpop.f32.mrb[28].mxu0  ;;  %2531 = vmatprep.subr.bf16.mxu1 %v2530_v54  ;;  %v1533_v1 = vmax.f32 %v1520_v61, 0.0  ;;  %v1943_v54 = vsel %vm448_vm0, %v3140_v11, %v1910_v26  ;;  %v1922_v41 = vrot.slane %v2458_v45, 7  ;;  %v2540_v58 = vpack.c.bf16 %v1937_v39, %v1931_v38 }
 0x605   : > { %v1524_v6 = vadd.f32 %v1523_v46, %v2825_v59  ;;  %v1525_v7 = vpop.f32.mrb[29].mxu0  ;;  %2533 = vmatpush1.bf16.msra.mxu1 %v2532_v43  ;;  %v2538_v43 = vpack.c.bf16 %v1938_v13, %v1932_v23  ;;  %v1948_v62 = vsel %vm454_vm1, %v1917_v24, %v1923_v10  ;;  %v2542_v37 = vpack.c.bf16 %v1946_v30, %v1942_v36 }
 0x606   : > { %v1526_v9 = vadd.f32 %v1525_v7, %v2825_v59  ;;  %v1941_v16 = vsel %vm466_vm6, %v1939_v44, %v1901_v28  ;;  %v1945_v55 = vsel %vm451_vm2, %v1943_v54, %v1916_v33  ;;  %v1927_v63 = vcombine.low %v3069_v34, %v3069_v34 }
 0x607   : > { %v1534_v22 = vmax.f32 %v1524_v6, 0.0  ;;  %v1950_v11 = vsel %vm457_vm3, %v1948_v62, %v3069_v34  ;;  %v1947_v45 = vsel %vm454_vm1, %v1916_v33, %v1922_v41  ;;  %v2544_v23 = vpack.c.bf16 %v1945_v55, %v1941_v16 }
 0x608   : > { %v1535_v31 = vmax.f32 %v1526_v9, 0.0  ;;  %v1952_v32 = vsel %vm460_vm4, %v1950_v11, 1.0  ;;  %v1949_v60 = vsel %vm457_vm3, %v1947_v45, %v1927_v63  ;;  %vm3302_vm0 = vcmask 326656  }
 0x609   : > { %v2536_v4 = vpack.c.bf16 %v1534_v22, %v1532_v20  ;;  %v1951_v61 = vsel %vm460_vm4, %v1949_v60, 1.0  ;;  %vm3303_vm1 = vmmov %vm3302_vm0 }
 0x60a   : > { %v2534_v42 = vpack.c.bf16 %v1535_v31, %v1533_v1  ;;  %vm3304_vm2 = vmmov %vm3302_vm0 }
 0x60b   : > { %vm3305_vm3 = vmmov %vm3302_vm0 }
 0x60c   : > { %2535 = vmatprep.subr.bf16.mxu1 %v2534_v42 }
 0x60d   : > { %2537 = vmatpush1.bf16.msra.mxu1 %v2536_v4 }
 0x60e   : > { %2539 = vmatprep.subr.bf16.mxu1 %v2538_v43 }
 0x610   : > { %2445 = vmatmul.mubr.msk.f32.vlgmr.msra.gmra.mrb[20].mxu1 %vm613_vm8, %v2979_v40 }
 0x611   : > { %2541 = vmatpush1.bf16.msra.mxu1 %v2540_v58  ;;  %2017 = vmatprep.mubr.f32.mxu1 %v2636_v0 }
 0x612   : > { %2543 = vmatprep.subr.bf16.mxu1 %v2542_v37 }
 0x615   : > { %2545 = vmatpush1.bf16.msra.mxu1 %v2544_v23 }
 0x616   : > { %1961 = vmatprep.subr.mxu1 %v1952_v32 }
 0x619   : > { %1962 = vmatpush1.msra.mxu1 %v1951_v61 }
 0x61a   : > { %2459 = vmatmul.mubr.msk.f32.vlgmr.msra.gmra.mrb[22].mxu1 %vm3302_vm0, %v2998_v29 }
 0x61b   : > { %2023 = vmatprep.mubr.f32.mxu1 %v2636_v0 }
 0x61e   : > { %2460 = vmatmul.mubr.msk.f32.gmra.mrb[24].mxu1 %vm3303_vm1, %v3006_v56 }
 0x61f   : > { %2029 = vmatprep.mubr.f32.mxu1 %v2636_v0 }
 0x622   : > { %2461 = vmatmul.mubr.msk.f32.gmra.mrb[26].mxu1 %vm3304_vm2, %v3014_v25 }
 0x623   : > { %2035 = vmatprep.mubr.f32.mxu1 %v2636_v0 }
 0x626   : > { %2462 = vmatmul.mubr.msk.f32.gmra.mrb[28].mxu1 %vm3305_vm3, %v3022_v57 }
 0x627   : > { %2211 = vmatprep.mubr.f32.mxu1 %v2636_v0 }
 0x6e3   : > { %v1602_v34 = vpop.f32.mrb[20].mxu1 }
 0x6e4   : > { %v1607_v29 = vadd.f32 %v1602_v34, %v3027_v2  ;;  %v1604_v46 = vpop.f32.mrb[21].mxu1 }
 0x6e5   : > { %v1608_v19 = vadd.f32 %v1604_v46, %v3027_v2 }
 0x6e6   : > { %v1609_v56 = vmax.f32 %v1607_v29, 0.0 }
 0x6e7   : > { %v1610_v21 = vmax.f32 %v1608_v19, 0.0 }
 0x6e9   : > { %v1613_v5 = vcombine.low %v1609_v56, %v1610_v21 }
 0x6eb   : > { %v1620_v6 = vrot.slane %v1613_v5, %v3031_v12 }
 0x6ed   : > { %v1627_v25 = vrot.slane %v1620_v6, %v3031_v12  ;;  %v2019_v7 = vpop.f32.mrb[22].mxu1 }
 0x6ee   : > { %v2021_v3 = vpop.f32.mrb[23].mxu1  ;;  %v2042_v17 = vmax.f32 %v2019_v7, 0.0 }
 0x6ef   : > { %1629 = vst.msk [vmem:[%s3038_s8 + $0x2] sm:$0x3] %vm3040_vm11, %v1627_v25  ;;  %v2043_v13 = vmax.f32 %v2021_v3, 0.0 }
 0x6f1   : > { %v2025_v57 = vpop.f32.mrb[24].mxu1 }
 0x6f2   : > { %v2044_v8 = vmax.f32 %v2025_v57, 0.0  ;;  %v2027_v9 = vpop.f32.mrb[25].mxu1 }
 0x6f3   : > { %v2045_v18 = vmax.f32 %v2027_v9, 0.0 }
 0x6f4   : > { %v2548_v27 = vpack.c.bf16 %v2044_v8, %v2042_v17 }
 0x6f5   : > { %v2546_v20 = vpack.c.bf16 %v2045_v18, %v2043_v13  ;;  %v2031_v22 = vpop.f32.mrb[26].mxu1 }
 0x6f6   : > { %v2033_v24 = vpop.f32.mrb[27].mxu1  ;;  %v2046_v1 = vmax.f32 %v2031_v22, 0.0 }
 0x6f7   : > { %2547 = vmatprep.subr.bf16.mxu0 %v2546_v20  ;;  %v2047_v35 = vmax.f32 %v2033_v24, 0.0 }
 0x6f8   : > { %2549 = vmatpush1.bf16.msra.mxu0 %v2548_v27 }
 0x6f9   : > { %v2037_v26 = vpop.f32.mrb[28].mxu1 }
 0x6fa   : > { %v2048_v31 = vmax.f32 %v2037_v26, 0.0  ;;  %v2039_v15 = vpop.f32.mrb[29].mxu1 }
 0x6fb   : > { %v2049_v4 = vmax.f32 %v2039_v15, 0.0 }
 0x6fc   : > { %v2552_v38 = vpack.c.bf16 %v2048_v31, %v2046_v1 }
 0x6fd   : > { %v2550_v39 = vpack.c.bf16 %v2049_v4, %v2047_v35 }
 0x6ff   : > { %2551 = vmatprep.subr.bf16.mxu0 %v2550_v39 }
 0x700   : > { %2553 = vmatpush1.bf16.msra.mxu0 %v2552_v38 }
 0x703   : > { %2463 = vmatmul.mubr.msk.f32.vlgmr.msra.gmra.mrb[30].mxu0 %vm613_vm8, %v2799_v49 }
 0x704   : > { %2120 = vmatprep.mubr.f32.mxu0 %v2636_v0 }
 0x707   : > { %2464 = vmatmul.mubr.msk.f32.gmra.mrb[32].mxu0 %vm613_vm8, %v2807_v48 }
 0x708   : > { %2126 = vmatprep.mubr.f32.mxu0 %v2636_v0 }
 0x70b   : > { %2465 = vmatmul.mubr.msk.f32.gmra.mrb[34].mxu0 %vm613_vm8, %v2797_v47 }
 0x70c   : > { %2132 = vmatprep.mubr.f32.mxu0 %v2636_v0 }
 0x70f   : > { %2466 = vmatmul.mubr.msk.f32.gmra.mrb[36].mxu0 %vm613_vm8, %v2805_v50 }
 0x7d6   : > { %v2116_v10 = vpop.f32.mrb[30].mxu0 }
 0x7d7   : > { %v2118_v42 = vpop.f32.mrb[31].mxu0  ;;  %v2117_v43 = vadd.f32 %v2116_v10, %v2820_v52 }
 0x7d8   : > { %v2119_v28 = vadd.f32 %v2118_v42, %v2820_v52 }
 0x7d9   : > { %v2139_v54 = vmax.f32 %v2117_v43, 0.0 }
 0x7da   : > { %v2122_v33 = vpop.f32.mrb[32].mxu0  ;;  %v2140_v58 = vmax.f32 %v2119_v28, 0.0 }
 0x7db   : > { %v2123_v36 = vadd.f32 %v2122_v33, %v2818_v51  ;;  %v2124_v30 = vpop.f32.mrb[33].mxu0 }
 0x7dc   : > { %v2125_v44 = vadd.f32 %v2124_v30, %v2818_v51 }
 0x7dd   : > { %v2141_v41 = vmax.f32 %v2123_v36, 0.0 }
 0x7de   : > { %v2142_v62 = vmax.f32 %v2125_v44, 0.0  ;;  %v2128_v37 = vpop.f32.mrb[34].mxu0 }
 0x7df   : > { %v2556_v16 = vpack.c.bf16 %v2141_v41, %v2139_v54  ;;  %v2130_v55 = vpop.f32.mrb[35].mxu0  ;;  %v2129_v11 = vadd.f32 %v2128_v37, %v2822_v53 }
 0x7e0   : > { %v2554_v63 = vpack.c.bf16 %v2142_v62, %v2140_v58  ;;  %v2131_v45 = vadd.f32 %v2130_v55, %v2822_v53 }
 0x7e1   : > { %v2143_v34 = vmax.f32 %v2129_v11, 0.0 }
 0x7e2   : > { %v2134_v23 = vpop.f32.mrb[36].mxu0  ;;  %2555 = vmatprep.subr.bf16.mxu1 %v2554_v63  ;;  %v2144_v46 = vmax.f32 %v2131_v45, 0.0 }
 0x7e3   : > { %v2135_v32 = vadd.f32 %v2134_v23, %v2825_v59  ;;  %v2136_v60 = vpop.f32.mrb[37].mxu0  ;;  %2557 = vmatpush1.bf16.msra.mxu1 %v2556_v16 }
 0x7e4   : > { %v2137_v61 = vadd.f32 %v2136_v60, %v2825_v59 }
 0x7e5   : > { %v2145_v29 = vmax.f32 %v2135_v32, 0.0 }
 0x7e6   : > { %v2146_v19 = vmax.f32 %v2137_v61, 0.0 }
 0x7e7   : > { %v2560_v56 = vpack.c.bf16 %v2145_v29, %v2143_v34 }
 0x7e8   : > { %v2558_v21 = vpack.c.bf16 %v2146_v19, %v2144_v46 }
 0x7ea   : > { %2559 = vmatprep.subr.bf16.mxu1 %v2558_v21 }
 0x7eb   : > { %2561 = vmatpush1.bf16.msra.mxu1 %v2560_v56 }
 0x7ee   : > { %2467 = vmatmul.mubr.msk.f32.vlgmr.msra.gmra.mrb[30].mxu1 %vm613_vm8, %v2799_v49 }
 0x7ef   : > { %2217 = vmatprep.mubr.f32.mxu1 %v2636_v0 }
 0x7f2   : > { %2468 = vmatmul.mubr.msk.f32.gmra.mrb[32].mxu1 %vm613_vm8, %v2807_v48 }
 0x7f3   : > { %2223 = vmatprep.mubr.f32.mxu1 %v2636_v0 }
 0x7f6   : > { %2469 = vmatmul.mubr.msk.f32.gmra.mrb[34].mxu1 %vm613_vm8, %v2797_v47 }
 0x7f7   : > { %2229 = vmatprep.mubr.f32.mxu1 %v2636_v0 }
 0x7fa   : > { %2470 = vmatmul.mubr.msk.f32.gmra.mrb[36].mxu1 %vm613_vm8, %v2805_v50 }
 0x7fb   : > { %2308 = vmatprep.mubr.f32.mxu1 %v2636_v0 }
 0x8c1   : > { %v2213_v5 = vpop.f32.mrb[30].mxu1 }
 0x8c2   : > { %v2215_v6 = vpop.f32.mrb[31].mxu1  ;;  %v2214_v49 = vadd.f32 %v2213_v5, %v2820_v52 }
 0x8c3   : > { %v2216_v25 = vadd.f32 %v2215_v6, %v2820_v52 }
 0x8c4   : > { %v2236_v47 = vmax.f32 %v2214_v49, 0.0 }
 0x8c5   : > { %v2219_v7 = vpop.f32.mrb[32].mxu1  ;;  %v2237_v8 = vmax.f32 %v2216_v25, 0.0 }
 0x8c6   : > { %v2220_v48 = vadd.f32 %v2219_v7, %v2818_v51  ;;  %v2221_v3 = vpop.f32.mrb[33].mxu1 }
 0x8c7   : > { %v2222_v57 = vadd.f32 %v2221_v3, %v2818_v51 }
 0x8c8   : > { %v2238_v17 = vmax.f32 %v2220_v48, 0.0 }
 0x8c9   : > { %v2239_v9 = vmax.f32 %v2222_v57, 0.0  ;;  %v2225_v13 = vpop.f32.mrb[34].mxu1 }
 0x8ca   : > { %v2564_v50 = vpack.c.bf16 %v2238_v17, %v2236_v47  ;;  %v2227_v18 = vpop.f32.mrb[35].mxu1  ;;  %v2226_v27 = vadd.f32 %v2225_v13, %v2822_v53 }
 0x8cb   : > { %v2562_v0 = vpack.c.bf16 %v2239_v9, %v2237_v8  ;;  %v2228_v20 = vadd.f32 %v2227_v18, %v2822_v53 }
 0x8cc   : > { %v2240_v26 = vmax.f32 %v2226_v27, 0.0 }
 0x8cd   : > { %v2231_v22 = vpop.f32.mrb[36].mxu1  ;;  %2563 = vmatprep.subr.bf16.mxu1 %v2562_v0  ;;  %v2241_v31 = vmax.f32 %v2228_v20, 0.0 }
 0x8ce   : > { %v2232_v52 = vadd.f32 %v2231_v22, %v2825_v59  ;;  %v2233_v24 = vpop.f32.mrb[37].mxu1  ;;  %2565 = vmatpush1.bf16.msra.mxu1 %v2564_v50 }
 0x8cf   : > { %v2234_v51 = vadd.f32 %v2233_v24, %v2825_v59 }
 0x8d0   : > { %v2242_v1 = vmax.f32 %v2232_v52, 0.0 }
 0x8d1   : > { %v2243_v15 = vmax.f32 %v2234_v51, 0.0 }
 0x8d2   : > { %v2568_v35 = vpack.c.bf16 %v2242_v1, %v2240_v26 }
 0x8d3   : > { %v2566_v4 = vpack.c.bf16 %v2243_v15, %v2241_v31 }
 0x8d5   : > { %2567 = vmatprep.subr.bf16.mxu1 %v2566_v4 }
 0x8d6   : > { %2569 = vmatpush1.bf16.msra.mxu1 %v2568_v35 }
 0x8d9   : > { %2471 = vmatmul.mubr.msk.f32.vlgmr.msra.gmra.mrb[38].mxu1 %vm613_vm8, %v2979_v40 }
 0x9ac   : > { %v2310_v53 = vpop.f32.mrb[38].mxu1 }
 0x9ad   : > { %v2315_v38 = vadd.f32 %v2310_v53, %v3027_v2  ;;  %v2312_v39 = vpop.f32.mrb[39].mxu1 }
 0x9ae   : > { %v2316_v10 = vadd.f32 %v2312_v39, %v3027_v2 }
 0x9af   : > { %v2317_v42 = vmax.f32 %v2315_v38, 0.0 }
 0x9b0   : > { %v2318_v59 = vmax.f32 %v2316_v10, 0.0 }
 0x9b2   : > { %v2321_v43 = vcombine.low %v2317_v42, %v2318_v59 }
 0x9b4   : > { %v2328_v28 = vrot.slane %v2321_v43, %v3031_v12 }
 0x9b6   : > { %v2335_v33 = vrot.slane %v2328_v28, %v3031_v12 }
 0x9b8   : > { %2337 = vst.msk [vmem:[%s3038_s8 + $0x4] sm:$0x3] %vm3040_vm11, %v2335_v33 }
 0x9b9 PF: > { %s12_s9 = sadd.s32 1, %s2634_s9  }
 0x9ba   : > { %p9_p4 = scmp.ge.s32.totalorder %s12_s9, 6  }
 0x9bc   :  { %11 = sbr.rel (!%p9_p4) target bundleno = 1 (0x1), region = 58 }

</bundles_post_ra>
